<compile_context>
chip_gen: v7x
topology: tpu7x:2x2x1
jax: 0.10.0
libtpu: 0.0.40
codegen_flags: <defaults>
</compile_context>

<pallas_src>
import functools

import jax
import jax.numpy as jnp
from jax.experimental import pallas as pl
from jax.experimental.pallas import tpu as pltpu


def _leaky(x, slope=0.1):
    return jnp.where(x > 0, x, slope * x)


def neural_lm3_kernel(h0_ref,                                     # (TB, C*E) dot_dtype
                      w1_ref, b1_ref, w2_ref, b2_ref,
                      w3_ref, b3_ref, wo_ref, bo_ref,             # resident weights
                      out_ref,                                    # (TB, V) fp32 logits
                      *, dot_dtype):
    def dense(h, w_ref, b_ref):
        # Cast activations to the MXU dtype at the dot only; bias add stays fp32.
        return jnp.dot(h.astype(dot_dtype), w_ref[...],
                       preferred_element_type=jnp.float32) + b_ref[...]

    h1 = _leaky(dense(h0_ref[...], w1_ref, b1_ref))
    # TODO(synk): nn.Dropout is identity in eval mode; training-mode dropout
    # (pltpu.prng_random_bits mask) intentionally not applied here.
    h2 = _leaky(dense(h1, w2_ref, b2_ref))
    h3 = _leaky(dense(h2, w3_ref, b3_ref))
    out_ref[...] = dense(h3, wo_ref, bo_ref)


def neural_lm3_forward(x, params, *, batch_tile=128, dot_dtype=jnp.bfloat16):
    """x: (B, C) int32 token ids. Returns (B, vocab_size) float32 logits."""
    B, C = x.shape
    emb = params["embed"]
    V, E = emb.shape
    CE = C * E
    H = params["w1"].shape[1]
    H2 = params["w3"].shape[1]

    # --- Embedding gather hoisted to XLA (perf review): kernel stays MXU-only. ---
    x_ids = jnp.clip(x, 0, V - 1).astype(jnp.int32)
    h0 = emb[x_ids].reshape(B, CE).astype(dot_dtype)

    # Pad the batch up to a multiple of the tile (tile is a multiple of 8 -> fp32
    # sublane-aligned; pad rows are zero and sliced off at the end).
    assert batch_tile % 8 == 0
    Bp = ((B + batch_tile - 1) // batch_tile) * batch_tile
    if Bp != B:
        h0 = jnp.pad(h0, ((0, Bp - B), (0, 0)))

    # MXU-friendly weight dtype; biases stay fp32 for the VPU broadcast-add.
    w1 = params["w1"].astype(dot_dtype); b1 = params["b1"].astype(jnp.float32)
    w2 = params["w2"].astype(dot_dtype); b2 = params["b2"].astype(jnp.float32)
    w3 = params["w3"].astype(dot_dtype); b3 = params["b3"].astype(jnp.float32)
    wo = params["wo"].astype(dot_dtype); bo = params["bo"].astype(jnp.float32)

    const = lambda i: (0, 0)               # weights: same block every step (resident)
    grid_spec = pl.GridSpec(
        grid=(Bp // batch_tile,),
        in_specs=[
            pl.BlockSpec((batch_tile, CE), lambda i: (i, 0)),   # h0 tile (pipelined)
            pl.BlockSpec((CE, H), const),   # w1
            pl.BlockSpec((1, H), const),    # b1
            pl.BlockSpec((H, H), const),    # w2
            pl.BlockSpec((1, H), const),    # b2
            pl.BlockSpec((H, H2), const),   # w3
            pl.BlockSpec((1, H2), const),   # b3
            pl.BlockSpec((H2, V), const),   # wo
            pl.BlockSpec((1, V), const),    # bo
        ],
        out_specs=pl.BlockSpec((batch_tile, V), lambda i: (i, 0)),
    )

    kernel = functools.partial(neural_lm3_kernel, dot_dtype=dot_dtype)

    out = pl.pallas_call(
        kernel,
        out_shape=jax.ShapeDtypeStruct((Bp, V), jnp.float32),
        grid_spec=grid_spec,
        compiler_params=pltpu.CompilerParams(
            dimension_semantics=("parallel",),   # megacore over batch tiles
            vmem_limit_bytes=32 * 1024 * 1024,   # safe on v7x's 64 MiB VMEM
        ),
    )(h0, w1, b1, w2, b2, w3, b3, wo, bo)

    return out[:B]


def init_params(key, vocab_size, embed_dim, context_size, hidden_dim):
    ks = jax.random.split(key, 9)

    def lin(kw, kb, fan_in, fan_out):
        bound = 1.0 / jnp.sqrt(fan_in)
        w = jax.random.uniform(kw, (fan_in, fan_out), jnp.float32, -bound, bound)
        b = jax.random.uniform(kb, (1, fan_out), jnp.float32, -bound, bound)
        return w, b

    embed = jax.random.normal(ks[0], (vocab_size, embed_dim), jnp.float32)
    w1, b1 = lin(ks[1], ks[2], context_size * embed_dim, hidden_dim)
    w2, b2 = lin(ks[3], ks[4], hidden_dim, hidden_dim)
    w3, b3 = lin(ks[5], ks[6], hidden_dim, hidden_dim // 2)
    wo, bo = lin(ks[7], ks[8], hidden_dim // 2, vocab_size)
    return dict(embed=embed, w1=w1, b1=b1, w2=w2, b2=b2,
                w3=w3, b3=b3, wo=wo, bo=bo)


def reference_forward(x, p, dot_dtype=jnp.float32):
    """Pure-JAX reference; dot_dtype mirrors the kernel's cast-at-dot numerics."""
    B = x.shape[0]
    h = p["embed"][x].reshape(B, -1)

    def dense(h, w, b):
        return jnp.dot(h.astype(dot_dtype), w.astype(dot_dtype),
                       preferred_element_type=jnp.float32) + b

    h = _leaky(dense(h, p["w1"], p["b1"]))
    h = _leaky(dense(h, p["w2"], p["b2"]))
    h = _leaky(dense(h, p["w3"], p["b3"]))
    return dense(h, p["wo"], p["bo"])


if __name__ == "__main__":
    # Lane-dense small config: C*E = 128, hidden = 256, hidden//2 = 128, vocab = 256.
    vocab_size, embed_dim, context_size, hidden_dim = 256, 16, 8, 256
    batch = 200   # not a tile multiple -> exercises padding; padded grid has 2 tiles

    key = jax.random.PRNGKey(0)
    k_param, k_x = jax.random.split(key)
    params = init_params(k_param, vocab_size, embed_dim, context_size, hidden_dim)
    x = jax.random.randint(k_x, (batch, context_size), 0, vocab_size, dtype=jnp.int32)

    out = neural_lm3_forward(x, params, batch_tile=128, dot_dtype=jnp.bfloat16)
    out = jax.block_until_ready(out)
    assert out.shape == (batch, vocab_size)
    assert jnp.all(jnp.isfinite(out))

    # Primary check: reference with matching bf16 cast-at-dot numerics (tight tol).
    ref_bf16 = reference_forward(x, params, dot_dtype=jnp.bfloat16)
    assert jnp.allclose(out, ref_bf16, atol=1e-2, rtol=1e-2)

    # Sanity check vs. the pure-fp32 module semantics (loose tol for bf16 rounding).
    ref_f32 = reference_forward(x, params, dot_dtype=jnp.float32)
    assert jnp.allclose(out, ref_f32, atol=1e-1, rtol=1e-1)

    print("KERNEL_OK")
</pallas_src>

<mosaic_0001>
module attributes {stable_mosaic.version = 11 : i64} {
  func.func @neural_lm3_kernel(%arg0: i32, %arg1: memref<128x128xbf16, #tpu.memory_space<vmem>>, %arg2: memref<128x256xbf16, #tpu.memory_space<vmem>>, %arg3: memref<1x256xf32, #tpu.memory_space<vmem>>, %arg4: memref<256x256xbf16, #tpu.memory_space<vmem>>, %arg5: memref<1x256xf32, #tpu.memory_space<vmem>>, %arg6: memref<256x128xbf16, #tpu.memory_space<vmem>>, %arg7: memref<1x128xf32, #tpu.memory_space<vmem>>, %arg8: memref<128x256xbf16, #tpu.memory_space<vmem>>, %arg9: memref<1x256xf32, #tpu.memory_space<vmem>>, %arg10: memref<128x256xf32, #tpu.memory_space<vmem>>) attributes {dimension_semantics = [#tpu.dimension_semantics<parallel>], iteration_bounds = array<i64: 2>, scalar_prefetch = 0 : i64, scratch_operands = 0 : i64, tpu.core_type = #tpu.core_type<tc>, window_params = [{transform_indices = @transform_0, window_bounds = array<i64: 128, 128>}, {pipeline_mode = #tpu.pipeline_mode<synchronous>, transform_indices = @transform_1, window_bounds = array<i64: 128, 256>}, {pipeline_mode = #tpu.pipeline_mode<synchronous>, transform_indices = @transform_2, window_bounds = array<i64: 1, 256>}, {pipeline_mode = #tpu.pipeline_mode<synchronous>, transform_indices = @transform_3, window_bounds = array<i64: 256, 256>}, {pipeline_mode = #tpu.pipeline_mode<synchronous>, transform_indices = @transform_4, window_bounds = array<i64: 1, 256>}, {pipeline_mode = #tpu.pipeline_mode<synchronous>, transform_indices = @transform_5, window_bounds = array<i64: 256, 128>}, {pipeline_mode = #tpu.pipeline_mode<synchronous>, transform_indices = @transform_6, window_bounds = array<i64: 1, 128>}, {pipeline_mode = #tpu.pipeline_mode<synchronous>, transform_indices = @transform_7, window_bounds = array<i64: 128, 256>}, {pipeline_mode = #tpu.pipeline_mode<synchronous>, transform_indices = @transform_8, window_bounds = array<i64: 1, 256>}, {transform_indices = @transform_9, window_bounds = array<i64: 128, 256>}]} {
    %c0 = arith.constant 0 : index
    %c0_0 = arith.constant 0 : index
    %0 = vector.load %arg1[%c0, %c0_0] : memref<128x128xbf16, #tpu.memory_space<vmem>>, vector<128x128xbf16>
    %c0_1 = arith.constant 0 : index
    %c0_2 = arith.constant 0 : index
    %1 = vector.load %arg2[%c0_1, %c0_2] : memref<128x256xbf16, #tpu.memory_space<vmem>>, vector<128x256xbf16>
    %cst = arith.constant dense<0.000000e+00> : vector<128x256xf32>
    %2 = tpu.matmul %0, %1, %cst {dimension_numbers = #tpu.dot_dimension_numbers<[1], [0], [0], [1], [0, 0, 1, 1], [], []>} : vector<128x128xbf16>, vector<128x256xbf16>, vector<128x256xf32> -> vector<128x256xf32>
    %c0_3 = arith.constant 0 : index
    %c0_4 = arith.constant 0 : index
    %3 = vector.load %arg3[%c0_3, %c0_4] : memref<1x256xf32, #tpu.memory_space<vmem>>, vector<1x256xf32>
    %4 = vector.broadcast %3 : vector<1x256xf32> to vector<128x256xf32>
    %5 = arith.addf %2, %4 : vector<128x256xf32>
    %cst_5 = arith.constant 0.000000e+00 : f32
    %6 = vector.broadcast %cst_5 : f32 to vector<128x256xf32>
    %7 = arith.cmpf ogt, %5, %6 : vector<128x256xf32>
    %cst_6 = arith.constant 1.000000e-01 : f32
    %8 = vector.broadcast %cst_6 : f32 to vector<128x256xf32>
    %9 = arith.mulf %8, %5 : vector<128x256xf32>
    %10 = arith.select %7, %5, %9 : vector<128x256xi1>, vector<128x256xf32>
    %11 = arith.truncf %10 : vector<128x256xf32> to vector<128x256xbf16>
    %c0_7 = arith.constant 0 : index
    %c0_8 = arith.constant 0 : index
    %12 = vector.load %arg4[%c0_7, %c0_8] : memref<256x256xbf16, #tpu.memory_space<vmem>>, vector<256x256xbf16>
    %cst_9 = arith.constant dense<0.000000e+00> : vector<128x256xf32>
    %13 = tpu.matmul %11, %12, %cst_9 {dimension_numbers = #tpu.dot_dimension_numbers<[1], [0], [0], [1], [0, 0, 1, 1], [], []>} : vector<128x256xbf16>, vector<256x256xbf16>, vector<128x256xf32> -> vector<128x256xf32>
    %c0_10 = arith.constant 0 : index
    %c0_11 = arith.constant 0 : index
    %14 = vector.load %arg5[%c0_10, %c0_11] : memref<1x256xf32, #tpu.memory_space<vmem>>, vector<1x256xf32>
    %15 = vector.broadcast %14 : vector<1x256xf32> to vector<128x256xf32>
    %16 = arith.addf %13, %15 : vector<128x256xf32>
    %cst_12 = arith.constant 0.000000e+00 : f32
    %17 = vector.broadcast %cst_12 : f32 to vector<128x256xf32>
    %18 = arith.cmpf ogt, %16, %17 : vector<128x256xf32>
    %cst_13 = arith.constant 1.000000e-01 : f32
    %19 = vector.broadcast %cst_13 : f32 to vector<128x256xf32>
    %20 = arith.mulf %19, %16 : vector<128x256xf32>
    %21 = arith.select %18, %16, %20 : vector<128x256xi1>, vector<128x256xf32>
    %22 = arith.truncf %21 : vector<128x256xf32> to vector<128x256xbf16>
    %c0_14 = arith.constant 0 : index
    %c0_15 = arith.constant 0 : index
    %23 = vector.load %arg6[%c0_14, %c0_15] : memref<256x128xbf16, #tpu.memory_space<vmem>>, vector<256x128xbf16>
    %cst_16 = arith.constant dense<0.000000e+00> : vector<128x128xf32>
    %24 = tpu.matmul %22, %23, %cst_16 {dimension_numbers = #tpu.dot_dimension_numbers<[1], [0], [0], [1], [0, 0, 1, 1], [], []>} : vector<128x256xbf16>, vector<256x128xbf16>, vector<128x128xf32> -> vector<128x128xf32>
    %c0_17 = arith.constant 0 : index
    %c0_18 = arith.constant 0 : index
    %25 = vector.load %arg7[%c0_17, %c0_18] : memref<1x128xf32, #tpu.memory_space<vmem>>, vector<1x128xf32>
    %26 = vector.broadcast %25 : vector<1x128xf32> to vector<128x128xf32>
    %27 = arith.addf %24, %26 : vector<128x128xf32>
    %cst_19 = arith.constant 0.000000e+00 : f32
    %28 = vector.broadcast %cst_19 : f32 to vector<128x128xf32>
    %29 = arith.cmpf ogt, %27, %28 : vector<128x128xf32>
    %cst_20 = arith.constant 1.000000e-01 : f32
    %30 = vector.broadcast %cst_20 : f32 to vector<128x128xf32>
    %31 = arith.mulf %30, %27 : vector<128x128xf32>
    %32 = arith.select %29, %27, %31 : vector<128x128xi1>, vector<128x128xf32>
    %33 = arith.truncf %32 : vector<128x128xf32> to vector<128x128xbf16>
    %c0_21 = arith.constant 0 : index
    %c0_22 = arith.constant 0 : index
    %34 = vector.load %arg8[%c0_21, %c0_22] : memref<128x256xbf16, #tpu.memory_space<vmem>>, vector<128x256xbf16>
    %cst_23 = arith.constant dense<0.000000e+00> : vector<128x256xf32>
    %35 = tpu.matmul %33, %34, %cst_23 {dimension_numbers = #tpu.dot_dimension_numbers<[1], [0], [0], [1], [0, 0, 1, 1], [], []>} : vector<128x128xbf16>, vector<128x256xbf16>, vector<128x256xf32> -> vector<128x256xf32>
    %c0_24 = arith.constant 0 : index
    %c0_25 = arith.constant 0 : index
    %36 = vector.load %arg9[%c0_24, %c0_25] : memref<1x256xf32, #tpu.memory_space<vmem>>, vector<1x256xf32>
    %37 = vector.broadcast %36 : vector<1x256xf32> to vector<128x256xf32>
    %38 = arith.addf %35, %37 : vector<128x256xf32>
    %c0_26 = arith.constant 0 : index
    %c0_27 = arith.constant 0 : index
    %39 = vector.load %arg10[%c0_26, %c0_27] : memref<128x256xf32, #tpu.memory_space<vmem>>, vector<128x256xf32>
    tpu.vector_store %arg10[%c0_26, %c0_27], %38 {strides = array<i32>} : memref<128x256xf32, #tpu.memory_space<vmem>>, vector<128x256xf32>,
    return
  }
  func.func @transform_0(%arg0: i32) -> (i32, i32) {
    %c0_i32 = arith.constant 0 : i32
    %c0_i32_0 = arith.constant 0 : i32
    return %arg0, %c0_i32 : i32, i32
  }
  func.func @transform_1(%arg0: i32) -> (i32, i32) {
    %c0_i32 = arith.constant 0 : i32
    %c0_i32_0 = arith.constant 0 : i32
    %c0_i32_1 = arith.constant 0 : i32
    return %c0_i32, %c0_i32_0 : i32, i32
  }
  func.func @transform_2(%arg0: i32) -> (i32, i32) {
    %c0_i32 = arith.constant 0 : i32
    %c0_i32_0 = arith.constant 0 : i32
    %c0_i32_1 = arith.constant 0 : i32
    return %c0_i32, %c0_i32_0 : i32, i32
  }
  func.func @transform_3(%arg0: i32) -> (i32, i32) {
    %c0_i32 = arith.constant 0 : i32
    %c0_i32_0 = arith.constant 0 : i32
    %c0_i32_1 = arith.constant 0 : i32
    return %c0_i32, %c0_i32_0 : i32, i32
  }
  func.func @transform_4(%arg0: i32) -> (i32, i32) {
    %c0_i32 = arith.constant 0 : i32
    %c0_i32_0 = arith.constant 0 : i32
    %c0_i32_1 = arith.constant 0 : i32
    return %c0_i32, %c0_i32_0 : i32, i32
  }
  func.func @transform_5(%arg0: i32) -> (i32, i32) {
    %c0_i32 = arith.constant 0 : i32
    %c0_i32_0 = arith.constant 0 : i32
    %c0_i32_1 = arith.constant 0 : i32
    return %c0_i32, %c0_i32_0 : i32, i32
  }
  func.func @transform_6(%arg0: i32) -> (i32, i32) {
    %c0_i32 = arith.constant 0 : i32
    %c0_i32_0 = arith.constant 0 : i32
    %c0_i32_1 = arith.constant 0 : i32
    return %c0_i32, %c0_i32_0 : i32, i32
  }
  func.func @transform_7(%arg0: i32) -> (i32, i32) {
    %c0_i32 = arith.constant 0 : i32
    %c0_i32_0 = arith.constant 0 : i32
    %c0_i32_1 = arith.constant 0 : i32
    return %c0_i32, %c0_i32_0 : i32, i32
  }
  func.func @transform_8(%arg0: i32) -> (i32, i32) {
    %c0_i32 = arith.constant 0 : i32
    %c0_i32_0 = arith.constant 0 : i32
    %c0_i32_1 = arith.constant 0 : i32
    return %c0_i32, %c0_i32_0 : i32, i32
  }
  func.func @transform_9(%arg0: i32) -> (i32, i32) {
    %c0_i32 = arith.constant 0 : i32
    %c0_i32_0 = arith.constant 0 : i32
    return %arg0, %c0_i32 : i32, i32
  }
}

</mosaic_0001>

<bundles_post_ra>
// kernel: tpu_custom_call.1
= control target key start
LH: loop header
LB: loop body
LE: loop exit
PB: predicated region body
PF: predicated region fallthrough
CT: control target
= control target key end

     0   :  { %s3129_s0 = inlined_call_operand.hbm [shape: bf16[256,128], index: 0, kind: input, shape index: {}]   ;;  %s3130_s1 = inlined_call_operand.hbm [shape: bf16[128,256], index: 1, kind: input, shape index: {}]   ;;  %s3131_s2 = inlined_call_operand.vmem [shape: f32[1,256], index: 2, kind: input, shape index: {}]   ;;  %s3132_s3 = inlined_call_operand.hbm [shape: bf16[256,256], index: 3, kind: input, shape index: {}]   ;;  %s3133_s4 = inlined_call_operand.vmem [shape: f32[1,256], index: 4, kind: input, shape index: {}]   ;;  %s3134_s5 = inlined_call_operand.hbm [shape: bf16[256,128], index: 5, kind: input, shape index: {}]   ;;  %s3135_s6 = inlined_call_operand.vmem [shape: f32[1,128], index: 6, kind: input, shape index: {}]   ;;  %s3136_s7 = inlined_call_operand.hbm [shape: bf16[128,256], index: 7, kind: input, shape index: {}]   ;;  %s3137_s8 = inlined_call_operand.vmem [shape: f32[1,256], index: 8, kind: input, shape index: {}]   ;;  %s3138_s9 = inlined_call_operand.hbm [shape: f32[256,256], index: 9, kind: output, shape index: {}]  }
   0x1   :  { %3149 = sst [smem:[#allocation18_spill]] %s3130_s1 }
   0x2   :  { %14 = vsyncpa [#allocation3], 0 }
   0x3   :  { %16 = vsyncpa [#allocation3 + $0x1], 0 }
   0x4   :  { %17 = vsyncpa [#allocation6], 0 }
   0x5   :  { %18 = vsyncpa [#allocation9], 0 }
   0x6   :  { %19 = vsyncpa [#allocation4], 0 }
   0x7   :  { %21 = vsyncpa [#allocation4 + $0x1], 0  ;;  %s2595_s30 = smov 0   ;;  %s2597_s10 = smov 0  }
   0x8   :  { %s2599_s11 = smov 0   ;;  %s2601_s12 = smov 0  }
   0x9 LB: > { %3150 = sst [smem:[#allocation16_spill]] %s2518_s30  ;;  %s2616_s13 = sadd.s32 4294967295, %s2530_s12   ;;  %s2530_s12 = sphi %s2601_s12, %s3177_s12   ;;  %s2526_s11 = sphi %s2599_s11, %s3176_s11   ;;  %s2522_s10 = sphi %s2597_s10, %s3175_s10   ;;  %s2518_s30 = sphi %s2595_s30, %s3174_s30  }
   0xa   : > { %s1905_s14 = sadd.s32 4294967294, %s2530_s12   ;;  %p47_p0 = scmp.ne.s32.totalorder %s2522_s10, %s2518_s30 }
   0xb   : > { %p3139_p1 = scmp.eq.s32.totalorder %s2616_s13, 0  ;;  %p245_p3 = scmp.eq.s32.totalorder %s1905_s14, 1 }
   0xc   : > { %p1906_p5 = scmp.ge.s32.totalorder %s2530_s12, 1  ;;  %p252_p7 = scmp.lt.s32.totalorder %s2530_s12, 3 }
   0xd   : > { %p2625_p4 = por %p3139_p1, %p47_p0  ;;  %p2630_p6 = por %p245_p3, %p47_p0 }
   0xe   : > { %p2635_p8 = pnand %p1906_p5, %p252_p7  ;;  %s2532_s18 = smov [#allocation5]  }
   0xf   : > { %s3151_s15 = scalar_select %p2625_p4, 1, 0 }
  0x10   : > { %s3152_s16 = scalar_select %p2630_p6, 1, 0 }
  0x11   : > { %s3154_s17 = scalar_select %p2635_p8, 1, 0 }
  0x12   : > { %3153 = sst [smem:[#allocation17_spill]] %s3152_s16  ;;  %s264_s19 = sshll.u32 %s2532_s18, 4  ;;  %s2639_s19 = int_to_ptr.vmem [resolvable:$true] %s264_s19 }
  0x13   : > { %p2120_p9 = pneg %p2635_p8  ;;  %s2533_s21 = smov [#allocation8]  }
  0x14   : > { %s296_s22 = sshll.u32 %s2533_s21, 4  ;;  %s3156_s1 = sld [smem:[#allocation18_spill]]  ;;  %s2650_s22 = int_to_ptr.vmem [resolvable:$true] %s296_s22 }
  0x15   : > { %p2646_p11 = pnand %p2120_p9, %p3139_p1 }
  0x17   : > { %p2660_p13 = pneg %p2646_p11 }
  0x1a   : > { %s2314_s25 = scalar_lea.hbm %s3156_s1, 2048 }
  0x1b   : > { %p2315_p12 = scmp.ne.s32.totalorder %s3156_s1, %s2314_s25  ;;  %p2321_p5 = scmp.lt.u32.totalorder %s2314_s25, %s3156_s1 }
  0x1d   : > { %p2317_p0 = pnand %p2660_p13, %p2315_p12 }
  0x1f   : > { %p2318_p3 = pneg %p2317_p0 }
  0x21   : > { %p2323_p7 = pnand %p2321_p5, %p2318_p3 }
  0x23   : > { %2326 = shalt.err (!%p2323_p7)
}
  0x24   : > { %s2327_s18 = scalar_lea.vmem %s2639_s19, 2048  ;;  %p2335_p2 = scmp.lt.s32.totalorder %s2639_s19, %s2639_s19 }
  0x25   : > { %p2328_p9 = scmp.ne.s32.totalorder %s2639_s19, %s2327_s18  ;;  %p2336_p6 = scmp.lt.s32.totalorder %s2327_s18, %s2327_s18 }
  0x27   : > { %p2330_p10 = pnand %p2328_p9, %p2660_p13  ;;  %p2337_p12 = por %p2336_p6, %p2335_p2 }
  0x29   : > { %p2331_p1 = pneg %p2330_p10 }
  0x2b   : > { %p2338_p0 = pnand %p2337_p12, %p2331_p1 }
  0x2d   : > { %2341 = shalt.err (!%p2338_p0)
}
  0x2e   : > { %s3142_s21 = smov 128   ;;  %s3144_s23 = smov 8  }
  0x2f   : > { %2123 = dma.hbm_to_vmem [thread:$0]  (!%p2646_p11), %s3156_s1, 2048, %s2639_s19, [#allocation6], %s3142_s21, %s3142_s21, %s3144_s23  }
  0x30   : > { %s2342_s29 = scalar_lea.hbm %s3134_s5, 2048 }
  0x31   : > { %p2343_p1 = scmp.ne.s32.totalorder %s3134_s5, %s2342_s29  ;;  %p2349_p10 = scmp.lt.u32.totalorder %s2342_s29, %s3134_s5 }
  0x33   : > { %p2345_p2 = pnand %p2343_p1, %p2660_p13 }
  0x35   : > { %p2346_p6 = pneg %p2345_p2 }
  0x37   : > { %p2351_p3 = pnand %p2349_p10, %p2346_p6 }
  0x39   : > { %2354 = shalt.err (!%p2351_p3)
}
  0x3a   : > { %s2355_s19 = scalar_lea.vmem %s2650_s22, 2048  ;;  %p2363_p12 = scmp.lt.s32.totalorder %s2650_s22, %s2650_s22 }
  0x3b   : > { %p2356_p5 = scmp.ne.s32.totalorder %s2650_s22, %s2355_s19  ;;  %p2364_p0 = scmp.lt.s32.totalorder %s2355_s19, %s2355_s19 }
  0x3d   : > { %p2358_p7 = pnand %p2356_p5, %p2660_p13  ;;  %p2365_p1 = por %p2364_p0, %p2363_p12 }
  0x3f   : > { %p2359_p9 = pneg %p2358_p7 }
  0x41   : > { %p2366_p2 = pnand %p2365_p1, %p2359_p9 }
  0x43   : > { %2369 = shalt.err (!%p2366_p2)
}
  0x44   : > { %s3148_s24 = smov 64   ;;  %s2537_s30 = smov 4  }
  0x45   : > { %2129 = dma.hbm_to_vmem [thread:$0]  (!%p2646_p11), %s3134_s5, 2048, %s2650_s22, [#allocation9], %s3148_s24, %s3148_s24, %s2537_s30  }
  0x46   : > { %s2538_s26 = smov [#allocation7]   ;;  %s2539_s29 = smov [#allocation10]  }
  0x47   : > { %s280_s27 = sshll.u32 %s2538_s26, 4  ;;  %s312_s14 = sshll.u32 %s2539_s29, 4  ;;  %s281_s27 = int_to_ptr.vmem [resolvable:$true] %s280_s27  ;;  %s2710_s14 = int_to_ptr.vmem [resolvable:$true] %s312_s14 }
  0x48   : > { %s2370_s21 = scalar_lea.hbm %s3132_s3, 4096 }
  0x49   : > { %p2371_p6 = scmp.ne.s32.totalorder %s3132_s3, %s2370_s21  ;;  %p2377_p5 = scmp.lt.u32.totalorder %s2370_s21, %s3132_s3 }
  0x4b   : > { %p2373_p10 = pnand %p2371_p6, %p2660_p13 }
  0x4d   : > { %p2374_p3 = pneg %p2373_p10 }
  0x4f   : > { %p2379_p7 = pnand %p2377_p5, %p2374_p3 }
  0x51   : > { %2382 = shalt.err (!%p2379_p7)
}
  0x52   : > { %s2383_s25 = scalar_lea.vmem %s281_s27, 4096  ;;  %p2391_p1 = scmp.lt.s32.totalorder %s281_s27, %s281_s27 }
  0x53   : > { %p2384_p9 = scmp.ne.s32.totalorder %s281_s27, %s2383_s25  ;;  %p2392_p2 = scmp.lt.s32.totalorder %s2383_s25, %s2383_s25 }
  0x55   : > { %p2386_p12 = pnand %p2384_p9, %p2660_p13  ;;  %p2393_p4 = por %p2392_p2, %p2391_p1 }
  0x57   : > { %p2387_p0 = pneg %p2386_p12 }
  0x59   : > { %p2394_p8 = pnand %p2393_p4, %p2387_p0 }
  0x5b   : > { %2397 = shalt.err (!%p2394_p8)
}
  0x5c   : > { %s3158_s1 = smov 8   ;;  %s3159_s23 = smov 128  }
  0x5d   : > { %2126 = dma.hbm_to_vmem [thread:$0]  (!%p2646_p11), %s3132_s3, 4096, %s281_s27, [#allocation6], %s3159_s23, %s3159_s23, %s3158_s1  }
  0x5e   : > { %s2398_s19 = scalar_lea.hbm %s3136_s7, 2048 }
  0x5f   : > { %p2399_p6 = scmp.ne.s32.totalorder %s3136_s7, %s2398_s19  ;;  %p2405_p10 = scmp.lt.u32.totalorder %s2398_s19, %s3136_s7 }
  0x61   : > { %p2401_p4 = pnand %p2399_p6, %p2660_p13 }
  0x63   : > { %p2402_p8 = pneg %p2401_p4 }
  0x65   : > { %p2407_p3 = pnand %p2405_p10, %p2402_p8 }
  0x67   : > { %2410 = shalt.err (!%p2407_p3)
}
  0x68   : > { %s2411_s27 = scalar_lea.vmem %s2710_s14, 2048  ;;  %p2419_p12 = scmp.lt.s32.totalorder %s2710_s14, %s2710_s14 }
  0x69   : > { %p2412_p5 = scmp.ne.s32.totalorder %s2710_s14, %s2411_s27  ;;  %p2420_p0 = scmp.lt.s32.totalorder %s2411_s27, %s2411_s27 }
  0x6b   : > { %p2414_p7 = pnand %p2412_p5, %p2660_p13  ;;  %p2421_p1 = por %p2420_p0, %p2419_p12 }
  0x6d   : > { %p2415_p9 = pneg %p2414_p7 }
  0x6f   : > { %p2422_p2 = pnand %p2421_p1, %p2415_p9 }
  0x71   : > { %2425 = shalt.err (!%p2422_p2)
}
  0x72   : > { %2132 = dma.hbm_to_vmem [thread:$0]  (!%p2646_p11), %s3136_s7, 2048, %s2710_s14, [#allocation9], %s3159_s23, %s3159_s23, %s3158_s1  }
  0x73   : > { %s2760_s20 = sadd.s32 1, %s2530_s12   ;;  %s34_s21 = sadd.s32 1, %s2526_s11 }
  0x74   : > { %s31_s28 = ssub.s32 %s2530_s12, %s2760_s20  ;;  %p41_p6 = scmp.ne.s32.totalorder %s2526_s11, %s2522_s10 }
  0x75   : > { %p32_p13 = scmp.eq.s32.totalorder %s31_s28, 0  ;;  %p42_p4 = scmp.eq.s32.totalorder %s2530_s12, 0 }
  0x76   : > { %p3160_p10 = scmp.eq.s32.totalorder %s2616_s13, 1  ;;  %p2145_p5 = scmp.lt.s32.totalorder %s2530_s12, 2 }
  0x77   : > { %s2769_s29 = scalar_select %p32_p13, %s2526_s11, %s34_s21  }
  0x78   : > { %p43_p8 = por %p42_p4, %p41_p6  ;;  %p2773_p3 = por %p3160_p10, %p41_p6 }
  0x79   : > { %s329_s19 = sand.u32 1, %s2526_s11   ;;  %s2017_s14 = sshll.u32 %s2530_s12, 10 }
  0x7a   : > { %s1912_s16 = sshll.u32 %s329_s19, 6  ;;  %s2783_s22 = scalar_lea.hbm %s3129_s0, %s2017_s14 }
  0x7b   : > { %s333_s25 = scalar_lea.vmem [#allocation2], %s1912_s16  ;;  %p2787_p11 = pnand %p2145_p5, %p43_p8 }
  0x7c   : > { %s340_s27 = sshll.u32 %s333_s25, 4  ;;  %s2791_s26 = scalar_lea.sflag [#allocation3], %s329_s19  ;;  %s2785_s27 = int_to_ptr.vmem [resolvable:$true] %s340_s27 }
  0x7d   : > { %s2426_s28 = scalar_lea.hbm %s2783_s22, 1024  ;;  %p2428_p9 = pneg %p2787_p11 }
  0x7e   : > { %p2427_p7 = scmp.ne.s32.totalorder %s2783_s22, %s2426_s28  ;;  %s2431_s14 = scalar_lea.hbm %s3129_s0, 2048 }
  0x7f   : > { %p2432_p1 = scmp.lt.u32.totalorder %s2783_s22, %s3129_s0  ;;  %p2433_p2 = scmp.lt.u32.totalorder %s2431_s14, %s2426_s28 }
  0x80   : > { %p2429_p12 = pnand %p2428_p9, %p2427_p7  ;;  %p2435_p6 = scmp.lt.u32.totalorder %s2426_s28, %s2783_s22 }
  0x81   : > { %p2434_p13 = por %p2433_p2, %p2432_p1 }
  0x82   : > { %p2430_p0 = pneg %p2429_p12 }
  0x83   : > { %p2436_p4 = por %p2435_p6, %p2434_p13 }
  0x85   : > { %p2437_p8 = pnand %p2436_p4, %p2430_p0 }
  0x87   : > { %2440 = shalt.err (!%p2437_p8)
}
  0x88   : > { %s2441_s19 = scalar_lea.vmem %s2785_s27, 1024  ;;  %s2540_s25 = smov [#allocation2]  }
  0x89   : > { %p2442_p10 = scmp.ne.s32.totalorder %s2785_s27, %s2441_s19  ;;  %s2446_s21 = sshll.u32 %s2540_s25, 4  ;;  %s2447_s21 = int_to_ptr.vmem [resolvable:$false] %s2446_s21 }
  0x8a   : > { %s2448_s16 = scalar_lea.vmem %s2447_s21, 2048  ;;  %p2449_p12 = scmp.lt.s32.totalorder %s2785_s27, %s2447_s21 }
  0x8b   : > { %p2444_p5 = pnand %p2442_p10, %p2428_p9  ;;  %p2450_p1 = scmp.lt.s32.totalorder %s2448_s16, %s2441_s19 }
  0x8d   : > { %p2445_p7 = pneg %p2444_p5  ;;  %p2451_p2 = por %p2450_p1, %p2449_p12 }
  0x8f   : > { %p2452_p13 = pnand %p2451_p2, %p2445_p7 }
  0x91   : > { %2455 = shalt.err (!%p2452_p13)
}
  0x92   : > { %s3163_s28 = smov 64   ;;  %p3164_p9 = scmp.ne.s32.totalorder %s3154_s17, 0 }
  0x93   : > { %2136 = dma.hbm_to_vmem [thread:$0]  (!%p2787_p11), %s2783_s22, 1024, %s2785_s27, %s2791_s26, %s3163_s28, %s3163_s28, %s2537_s30  }
  0x94   : > { %352 = sbr.rel (%p3164_p9) target bundleno = 1154 (0x482), region = 56  ;;  %s2825_s14 = sand.u32 (!%p3164_p9), 1, %s2522_s10  }
  0x95   : > { %s1916_s1 = sshll.u32 (!%p3164_p9), %s2825_s14, 6  ;;  %s355_s23 = scalar_lea.sflag (!%p3164_p9), [#allocation3], %s2825_s14 }
  0x96   : > { %s2829_s19 = scalar_lea.vmem (!%p3164_p9), [#allocation2], %s1916_s1  ;;  %p3165_p0 = scmp.ne.s32.totalorder (!%p3164_p9), %s3151_s15, 0 }
  0x9b   : > { %2501 = dma.done.wait (%p3165_p0), %s355_s23, 1024  }
  0x9c   : > { %2503 = vsyncadd (%p3165_p0), %s355_s23, 4294966272  ;;  %p3166_p11 = scmp.eq.s32.totalorder %s2616_s13, 0 }
  0x9e   : > { %2505 = dma.done.wait (%p3166_p11), [#allocation6], 6144   ;;  %p3167_p6 = pmov %p3166_p11 }
  0xa0   : > { %2507 = vsyncadd (%p3167_p6), [#allocation6], 4294961152  ;;  %p3168_p4 = pmov %p3167_p6 }
  0xa2   : > { %2509 = dma.done.wait (%p3168_p4), [#allocation9], 4096   ;;  %p3169_p8 = pmov %p3168_p4 }
  0xa3   : > { %v2541_v0 = vmov 0   ;;  %v2194_v1 = vld [vmem:[#allocation5 + $0x4] ss:$8 sps:$4 sm:$0xff]   ;;  %v2196_v2 = vld [vmem:[#allocation5] ss:$8 sps:$4 sm:$0xff]   ;;  %v2220_v34 = vld [vmem:[%s2829_s19 + $0x10] sm:$0xff]  }
  0xa4   : > { %2511 = vsyncadd (%p3169_p8), [#allocation9], 4294963200  ;;  %616 = vmatprep.mubr.bf16.mxu0 %v2541_v0  ;;  %584 = vmatprep.subr.bf16.mxu0 %v2194_v1  ;;  %v2197_v3 = vld [vmem:[#allocation5 + $0x14] ss:$8 sps:$4 sm:$0xff]   ;;  %v2199_v4 = vld [vmem:[#allocation5 + $0x10] ss:$8 sps:$4 sm:$0xff]  }
  0xa5   : > { %585 = vmatpush1.bf16.msra.mxu0 %v2196_v2  ;;  %v2200_v5 = vld [vmem:[#allocation5 + $0x24] ss:$8 sps:$4 sm:$0xff]   ;;  %v2202_v6 = vld [vmem:[#allocation5 + $0x20] ss:$8 sps:$4 sm:$0xff]   ;;  %v2203_v7 = vld [vmem:[#allocation5 + $0x34] ss:$8 sps:$4 sm:$0xff]  }
  0xa6   : > { %586 = vmatprep.subr.bf16.mxu0 %v2197_v3  ;;  %v2205_v8 = vld [vmem:[#allocation5 + $0x30] ss:$8 sps:$4 sm:$0xff]   ;;  %v2206_v9 = vld [vmem:[#allocation5 + $0x44] ss:$8 sps:$4 sm:$0xff]   ;;  %v2208_v10 = vld [vmem:[#allocation5 + $0x40] ss:$8 sps:$4 sm:$0xff]  }
  0xa7   : > { %v2209_v11 = vld [vmem:[#allocation5 + $0x54] ss:$8 sps:$4 sm:$0xff]   ;;  %v2211_v12 = vld [vmem:[#allocation5 + $0x50] ss:$8 sps:$4 sm:$0xff]   ;;  %v2212_v13 = vld [vmem:[#allocation5 + $0x64] ss:$8 sps:$4 sm:$0xff]  }
  0xa8   : > { %v2226_v14 = vld [vmem:[#allocation7 + $0x4] ss:$8 sps:$4 sm:$0xff]   ;;  %v2228_v15 = vld [vmem:[#allocation7] ss:$8 sps:$4 sm:$0xff]   ;;  %v2229_v16 = vld [vmem:[#allocation7 + $0x14] ss:$8 sps:$4 sm:$0xff]  }
  0xa9   : > { %587 = vmatpush1.bf16.msra.mxu0 %v2199_v4  ;;  %1013 = vmatprep.subr.bf16.mxu1 %v2226_v14  ;;  %v2231_v17 = vld [vmem:[#allocation7 + $0x10] ss:$8 sps:$4 sm:$0xff]   ;;  %v2214_v18 = vld [vmem:[#allocation5 + $0x60] ss:$8 sps:$4 sm:$0xff]   ;;  %v2232_v19 = vld [vmem:[#allocation7 + $0x24] ss:$8 sps:$4 sm:$0xff]  }
  0xaa   : > { %588 = vmatprep.subr.bf16.mxu0 %v2200_v5  ;;  %1014 = vmatpush1.bf16.msra.mxu1 %v2228_v15  ;;  %v2215_v20 = vld [vmem:[#allocation5 + $0x74] ss:$8 sps:$4 sm:$0xff]   ;;  %v2234_v21 = vld [vmem:[#allocation7 + $0x20] ss:$8 sps:$4 sm:$0xff]   ;;  %v2217_v22 = vld [vmem:[#allocation5 + $0x70] ss:$8 sps:$4 sm:$0xff]  }
  0xab   : > { %1015 = vmatprep.subr.bf16.mxu1 %v2229_v16  ;;  %v2235_v23 = vld [vmem:[#allocation7 + $0x34] ss:$8 sps:$4 sm:$0xff]   ;;  %v2218_v24 = vld [vmem:[%s2829_s19] sm:$0xff]   ;;  %v2237_v25 = vld [vmem:[#allocation7 + $0x30] ss:$8 sps:$4 sm:$0xff]   ;;  %s1921_s21 = sshll.u32 %s2825_s14, 8 }
  0xac   : > { %v2238_v26 = vld [vmem:[#allocation7 + $0x44] ss:$8 sps:$4 sm:$0xff]   ;;  %v2240_v27 = vld [vmem:[#allocation7 + $0x40] ss:$8 sps:$4 sm:$0xff]   ;;  %v2241_v28 = vld [vmem:[#allocation7 + $0x54] ss:$8 sps:$4 sm:$0xff]  }
  0xad   : > { %589 = vmatpush1.bf16.msra.mxu0 %v2202_v6  ;;  %v2219_v29 = vld [vmem:[%s2829_s19 + $0x8] sm:$0xff]   ;;  %v2243_v30 = vld [vmem:[#allocation7 + $0x50] ss:$8 sps:$4 sm:$0xff]   ;;  %v2247_v33 = vld [vmem:[#allocation7 + $0x74] ss:$8 sps:$4 sm:$0xff]   ;;  %s3014_s16 = scalar_lea.vmem [#allocation11], %s1921_s21 }
  0xae   : > { %590 = vmatprep.subr.bf16.mxu0 %v2203_v7  ;;  %1016 = vmatpush1.bf16.msra.mxu1 %v2231_v17  ;;  %v2244_v31 = vld [vmem:[#allocation7 + $0x64] ss:$8 sps:$4 sm:$0xff]   ;;  %v2246_v32 = vld [vmem:[#allocation7 + $0x60] ss:$8 sps:$4 sm:$0xff]   ;;  %v2249_v35 = vld [vmem:[#allocation7 + $0x70] ss:$8 sps:$4 sm:$0xff]  }
  0xaf   : > { %1017 = vmatprep.subr.bf16.mxu1 %v2232_v19  ;;  %v2250_v36 = vld [vmem:[#allocation7 + $0x84] ss:$8 sps:$4 sm:$0xff]   ;;  %v2252_v37 = vld [vmem:[#allocation7 + $0x80] ss:$8 sps:$4 sm:$0xff]   ;;  %v2253_v38 = vld [vmem:[#allocation7 + $0x94] ss:$8 sps:$4 sm:$0xff]  }
  0xb0   : > { %v2221_v39 = vld [vmem:[%s2829_s19 + $0x18] sm:$0xff]   ;;  %v2256_v41 = vld [vmem:[#allocation7 + $0xa4] ss:$8 sps:$4 sm:$0xff]   ;;  %v2258_v42 = vld [vmem:[#allocation7 + $0xa0] ss:$8 sps:$4 sm:$0xff]   ;;  %s2019_s28 = sshll.u32 %s2616_s13, 12 }
  0xb1   : > { %591 = vmatpush1.bf16.msra.mxu0 %v2205_v8  ;;  %v2255_v40 = vld [vmem:[#allocation7 + $0x90] ss:$8 sps:$4 sm:$0xff]   ;;  %v2259_v43 = vld [vmem:[#allocation7 + $0xb4] ss:$8 sps:$4 sm:$0xff]   ;;  %v2222_v44 = vld [vmem:[%s2829_s19 + $0x20] sm:$0xff]   ;;  %v446_v8 = vlaneseq  ;;  %s1794_s1 = sshll.u32 %s3014_s16, 4  ;;  %s3079_s15 = scalar_lea.hbm %s3138_s9, %s2019_s28  ;;  %s3081_s1 = int_to_ptr.vmem [resolvable:$true] %s1794_s1 }
  0xb2   : > { %592 = vmatprep.subr.bf16.mxu0 %v2206_v9  ;;  %1018 = vmatpush1.bf16.msra.mxu1 %v2234_v21  ;;  %v2261_v45 = vld [vmem:[#allocation7 + $0xb0] ss:$8 sps:$4 sm:$0xff]   ;;  %v2262_v46 = vld [vmem:[#allocation7 + $0xc4] ss:$8 sps:$4 sm:$0xff]   ;;  %v2264_v47 = vld [vmem:[#allocation7 + $0xc0] ss:$8 sps:$4 sm:$0xff]  }
  0xb3   : > { %1019 = vmatprep.subr.bf16.mxu1 %v2235_v23  ;;  %v2223_v48 = vld [vmem:[%s2829_s19 + $0x28] sm:$0xff]   ;;  %v2224_v49 = vld [vmem:[%s2829_s19 + $0x30] sm:$0xff]   ;;  %v2225_v50 = vld [vmem:[%s2829_s19 + $0x38] sm:$0xff]   ;;  %v447_v9 = vshrl.u32 %v446_v8, 7  ;;  %s1780_s13 = scalar_lea.sflag [#allocation4], %s2825_s14  ;;  %s2456_s17 = scalar_lea.vmem %s3081_s1, 4096 }
  0xb4   : > { %v2265_v51 = vld [vmem:[#allocation7 + $0xd4] ss:$8 sps:$4 sm:$0xff]   ;;  %v2267_v52 = vld [vmem:[#allocation7 + $0xd0] ss:$8 sps:$4 sm:$0xff]   ;;  %v2268_v53 = vld [vmem:[#allocation7 + $0xe4] ss:$8 sps:$4 sm:$0xff]   ;;  %p2457_p10 = scmp.ne.s32.totalorder %s3081_s1, %s2456_s17 }
  0xb5   : > { %593 = vmatpush1.bf16.msra.mxu0 %v2208_v10  ;;  %v2270_v54 = vld [vmem:[#allocation7 + $0xe0] ss:$8 sps:$4 sm:$0xff]   ;;  %v2271_v55 = vld [vmem:[#allocation7 + $0xf4] ss:$8 sps:$4 sm:$0xff]   ;;  %v2273_v56 = vld [vmem:[#allocation7 + $0xf0] ss:$8 sps:$4 sm:$0xff]  }
  0xb6   : > { %594 = vmatprep.subr.bf16.mxu0 %v2209_v11  ;;  %1020 = vmatpush1.bf16.msra.mxu1 %v2237_v25  ;;  %v2274_v57 = vld [vmem:[#allocation8 + $0x40] sm:$0xff]   ;;  %v2276_v59 = vld [vmem:[#allocation8 + $0x48] sm:$0xff]   ;;  %v2278_v61 = vld [vmem:[#allocation8 + $0x50] sm:$0xff]   ;;  %v2859_v10 = vsub.s32 0, %v447_v9  ;;  %p2458_p5 = pnand %p2457_p10, %p2773_p3  ;;  %s2542_s30 = smov [#allocation11]  }
  0xb7   : > { %1021 = vmatprep.subr.bf16.mxu1 %v2238_v26  ;;  %v2275_v58 = vld [vmem:[#allocation8] sm:$0xff]   ;;  %v2277_v60 = vld [vmem:[#allocation8 + $0x8] sm:$0xff]   ;;  %v2279_v62 = vld [vmem:[#allocation8 + $0x10] sm:$0xff]   ;;  %s2460_s22 = sshll.u32 %s2542_s30, 4  ;;  %s2461_s22 = int_to_ptr.vmem [resolvable:$false] %s2460_s22 }
  0xb8   : > { %v2280_v63 = vld [vmem:[#allocation8 + $0x58] sm:$0xff]   ;;  %v2282_v2 = vld [vmem:[#allocation8 + $0x60] sm:$0xff]   ;;  %v2284_v4 = vld [vmem:[#allocation8 + $0x68] sm:$0xff]   ;;  %p2459_p7 = pneg %p2458_p5  ;;  %s2462_s27 = scalar_lea.vmem %s2461_s22, 8192 }
  0xb9   : > { %595 = vmatpush1.bf16.msra.mxu0 %v2211_v12  ;;  %v2281_v1 = vld [vmem:[#allocation8 + $0x18] sm:$0xff]   ;;  %v2283_v3 = vld [vmem:[#allocation8 + $0x20] sm:$0xff]   ;;  %v2285_v5 = vld [vmem:[#allocation8 + $0x28] sm:$0xff]   ;;  %v2864_v12 = vsub.s32 1, %v447_v9  ;;  %p2463_p12 = scmp.lt.s32.totalorder %s3081_s1, %s2461_s22  ;;  %p2464_p1 = scmp.lt.s32.totalorder %s2462_s27, %s2456_s17 }
  0xba   : > { %596 = vmatprep.subr.bf16.mxu0 %v2212_v13  ;;  %1022 = vmatpush1.bf16.msra.mxu1 %v2240_v27  ;;  %v2286_v6 = vld [vmem:[#allocation8 + $0x70] sm:$0xff]   ;;  %v444_v11 = vld [vmem:[%s3131_s2] sm:$0x3] }
  0xbb   : > { %1023 = vmatprep.subr.bf16.mxu1 %v2241_v28  ;;  %v2287_v7 = vld [vmem:[#allocation8 + $0x30] sm:$0xff]   ;;  %v2867_v13 = vrot.slane %v444_v11, %v2859_v10  ;;  %v2870_v14 = vrot.slane %v444_v11, %v2864_v12  ;;  %p2465_p2 = por %p2464_p1, %p2463_p12 }
  0xbd   : > { %597 = vmatpush1.bf16.msra.mxu0 %v2214_v18  ;;  %p2466_p13 = pnand %p2465_p2, %p2459_p7 }
  0xbe   : > { %598 = vmatprep.subr.bf16.mxu0 %v2215_v20  ;;  %1024 = vmatpush1.bf16.msra.mxu1 %v2243_v30 }
  0xbf   : > { %1025 = vmatprep.subr.bf16.mxu1 %v2244_v31 }
  0xc1   : > { %599 = vmatpush1.bf16.msra.mxu0 %v2217_v22 }
  0xc2   : > { %1026 = vmatpush1.bf16.msra.mxu1 %v2246_v32  ;;  %2020 = vmatprep.subr.bf16.mxu0 %v2274_v57 }
  0xc3   : > { %1027 = vmatprep.subr.bf16.mxu1 %v2247_v33 }
  0xc4   : > { %617 = vmatmul.mubr.bf16.vlgmr.msra.gmra.mrb[0].mxu0 %v2218_v24 }
  0xc5   : > { %626 = vmatprep.mubr.bf16.mxu0 %v2541_v0  ;;  %2021 = vmatpush3.bf16.msra.mxu0 %v2275_v58 }
  0xc6   : > { %1028 = vmatpush1.bf16.msra.mxu1 %v2249_v35  ;;  %2022 = vmatprep.subr.bf16.mxu0 %v2276_v59 }
  0xc7   : > { %1029 = vmatprep.subr.bf16.mxu1 %v2250_v36 }
  0xc9   : > { %2023 = vmatpush3.bf16.msra.mxu0 %v2277_v60 }
  0xca   : > { %1030 = vmatpush1.bf16.msra.mxu1 %v2252_v37  ;;  %2024 = vmatprep.subr.bf16.mxu0 %v2278_v61 }
  0xcb   : > { %1031 = vmatprep.subr.bf16.mxu1 %v2253_v38 }
  0xcc   : > { %627 = vmatmul.mubr.bf16.gmra.mrb[4].mxu0 %v2219_v29 }
  0xcd   : > { %636 = vmatprep.mubr.bf16.mxu0 %v2541_v0  ;;  %2025 = vmatpush3.bf16.msra.mxu0 %v2279_v62 }
  0xce   : > { %1032 = vmatpush1.bf16.msra.mxu1 %v2255_v40  ;;  %2026 = vmatprep.subr.bf16.mxu0 %v2280_v63 }
  0xcf   : > { %1033 = vmatprep.subr.bf16.mxu1 %v2256_v41 }
  0xd1   : > { %2027 = vmatpush3.bf16.msra.mxu0 %v2281_v1 }
  0xd2   : > { %1034 = vmatpush1.bf16.msra.mxu1 %v2258_v42  ;;  %2028 = vmatprep.subr.bf16.mxu0 %v2282_v2 }
  0xd3   : > { %1035 = vmatprep.subr.bf16.mxu1 %v2259_v43 }
  0xd4   : > { %637 = vmatmul.mubr.bf16.gmra.mrb[8].mxu0 %v2220_v34 }
  0xd5   : > { %646 = vmatprep.mubr.bf16.mxu0 %v2541_v0  ;;  %2029 = vmatpush3.bf16.msra.mxu0 %v2283_v3 }
  0xd6   : > { %1036 = vmatpush1.bf16.msra.mxu1 %v2261_v45  ;;  %2030 = vmatprep.subr.bf16.mxu0 %v2284_v4 }
  0xd7   : > { %1037 = vmatprep.subr.bf16.mxu1 %v2262_v46 }
  0xd9   : > { %2031 = vmatpush3.bf16.msra.mxu0 %v2285_v5 }
  0xda   : > { %1038 = vmatpush1.bf16.msra.mxu1 %v2264_v47  ;;  %2032 = vmatprep.subr.bf16.mxu0 %v2286_v6 }
  0xdb   : > { %1039 = vmatprep.subr.bf16.mxu1 %v2265_v51 }
  0xdc   : > { %647 = vmatmul.mubr.bf16.gmra.mrb[12].mxu0 %v2221_v39 }
  0xdd   : > { %656 = vmatprep.mubr.bf16.mxu0 %v2541_v0  ;;  %2033 = vmatpush3.bf16.msra.mxu0 %v2287_v7 }
  0xde   : > { %1040 = vmatpush1.bf16.msra.mxu1 %v2267_v52 }
  0xdf   : > { %1041 = vmatprep.subr.bf16.mxu1 %v2268_v53 }
  0xe2   : > { %1042 = vmatpush1.bf16.msra.mxu1 %v2270_v54 }
  0xe3   : > { %1043 = vmatprep.subr.bf16.mxu1 %v2271_v55 }
  0xe4   : > { %657 = vmatmul.mubr.bf16.gmra.mrb[16].mxu0 %v2222_v44 }
  0xe5   : > { %666 = vmatprep.mubr.bf16.mxu0 %v2541_v0 }
  0xe6   : > { %1044 = vmatpush1.bf16.msra.mxu1 %v2273_v56 }
  0xec   : > { %667 = vmatmul.mubr.bf16.gmra.mrb[20].mxu0 %v2223_v48 }
  0xed   : > { %676 = vmatprep.mubr.bf16.mxu0 %v2541_v0 }
  0xf4   : > { %677 = vmatmul.mubr.bf16.gmra.mrb[24].mxu0 %v2224_v49 }
  0xf5   : > { %686 = vmatprep.mubr.bf16.mxu0 %v2541_v0 }
  0xfc   : > { %687 = vmatmul.mubr.bf16.gmra.mrb[28].mxu0 %v2225_v50 }
 0x197   : > { %v618_v15 = vpop.f32.mrb[0].mxu0 }
 0x198   : > { %v619_v16 = vadd.f32 %v618_v15, %v2867_v13  ;;  %v620_v17 = vpop.f32.mrb[1].mxu0 }
 0x199   : > { %v621_v18 = vadd.f32 %v620_v17, %v2870_v14  ;;  %v622_v19 = vpop.f32.mrb[2].mxu0 }
 0x19a   : > { %v729_v20 = vmul.f32 0.1, %v619_v16  ;;  %v623_v21 = vadd.f32 %v622_v19, %v2867_v13  ;;  %v624_v22 = vpop.f32.mrb[3].mxu0  ;;  %vm697_vm0 = vcmp.gt.f32.partialorder %v619_v16, 0.0 }
 0x19b   : > { %v730_v23 = vmul.f32 0.1, %v621_v18  ;;  %v625_v24 = vadd.f32 %v624_v22, %v2870_v14  ;;  %vm698_vm2 = vcmp.gt.f32.partialorder %v621_v18, 0.0 }
 0x19c   : > { %vm699_vm1 = vcmp.gt.f32.partialorder %v623_v21, 0.0  ;;  %v731_v25 = vmul.f32 0.1, %v623_v21  ;;  %v761_v27 = vsel %vm697_vm0, %v619_v16, %v729_v20 }
 0x19d   : > { %v732_v26 = vmul.f32 0.1, %v625_v24  ;;  %vm700_vm3 = vcmp.gt.f32.partialorder %v625_v24, 0.0  ;;  %v762_v30 = vsel %vm698_vm2, %v621_v18, %v730_v23 }
 0x19e   : > { %v763_v28 = vsel %vm699_vm1, %v623_v21, %v731_v25 }
 0x19f   : > { %v628_v29 = vpop.f32.mrb[4].mxu0  ;;  %v764_v31 = vsel %vm700_vm3, %v625_v24, %v732_v26  ;;  %v793_v32 = vpack.c.bf16 %v763_v28, %v761_v27 }
 0x1a0   : > { %v629_v33 = vadd.f32 %v628_v29, %v2867_v13  ;;  %v630_v34 = vpop.f32.mrb[5].mxu0  ;;  %v794_v35 = vpack.c.bf16 %v764_v31, %v762_v30 }
 0x1a1   : > { %v631_v36 = vadd.f32 %v630_v34, %v2870_v14  ;;  %v632_v37 = vpop.f32.mrb[6].mxu0 }
 0x1a2   : > { %v733_v38 = vmul.f32 0.1, %v629_v33  ;;  %v633_v39 = vadd.f32 %v632_v37, %v2867_v13  ;;  %v634_v40 = vpop.f32.mrb[7].mxu0  ;;  %1045 = vmatprep.mubr.bf16.mxu1 %v794_v35  ;;  %vm701_vm4 = vcmp.gt.f32.partialorder %v629_v33, 0.0 }
 0x1a3   : > { %v734_v41 = vmul.f32 0.1, %v631_v36  ;;  %v635_v42 = vadd.f32 %v634_v40, %v2870_v14  ;;  %1046 = vmatmul.mubr.bf16.vlgmr.msra.gmra.mrb[0].mxu1 %v793_v32  ;;  %vm702_vm5 = vcmp.gt.f32.partialorder %v631_v36, 0.0 }
 0x1a4   : > { %vm703_vm6 = vcmp.gt.f32.partialorder %v633_v39, 0.0  ;;  %v735_v43 = vmul.f32 0.1, %v633_v39  ;;  %v765_v45 = vsel %vm701_vm4, %v629_v33, %v733_v38 }
 0x1a5   : > { %vm704_vm7 = vcmp.gt.f32.partialorder %v635_v42, 0.0  ;;  %v736_v44 = vmul.f32 0.1, %v635_v42  ;;  %v766_v48 = vsel %vm702_vm5, %v631_v36, %v734_v41 }
 0x1a6   : > { %v767_v46 = vsel %vm703_vm6, %v633_v39, %v735_v43 }
 0x1a7   : > { %v638_v47 = vpop.f32.mrb[8].mxu0  ;;  %v768_v49 = vsel %vm704_vm7, %v635_v42, %v736_v44  ;;  %v795_v50 = vpack.c.bf16 %v767_v46, %v765_v45 }
 0x1a8   : > { %v639_v51 = vadd.f32 %v638_v47, %v2867_v13  ;;  %v640_v52 = vpop.f32.mrb[9].mxu0  ;;  %v796_v53 = vpack.c.bf16 %v768_v49, %v766_v48 }
 0x1a9   : > { %v641_v54 = vadd.f32 %v640_v52, %v2870_v14  ;;  %v642_v55 = vpop.f32.mrb[10].mxu0 }
 0x1aa   : > { %v737_v56 = vmul.f32 0.1, %v639_v51  ;;  %v643_v57 = vadd.f32 %v642_v55, %v2867_v13  ;;  %v644_v58 = vpop.f32.mrb[11].mxu0  ;;  %1055 = vmatprep.mubr.bf16.mxu1 %v796_v53  ;;  %vm705_vm8 = vcmp.gt.f32.partialorder %v639_v51, 0.0 }
 0x1ab   : > { %v738_v59 = vmul.f32 0.1, %v641_v54  ;;  %v645_v60 = vadd.f32 %v644_v58, %v2870_v14  ;;  %1056 = vmatmul.mubr.bf16.gmra.mrb[4].mxu1 %v795_v50  ;;  %vm706_vm9 = vcmp.gt.f32.partialorder %v641_v54, 0.0 }
 0x1ac   : > { %vm707_vm10 = vcmp.gt.f32.partialorder %v643_v57, 0.0  ;;  %v739_v61 = vmul.f32 0.1, %v643_v57  ;;  %v769_v63 = vsel %vm705_vm8, %v639_v51, %v737_v56 }
 0x1ad   : > { %vm708_vm11 = vcmp.gt.f32.partialorder %v645_v60, 0.0  ;;  %v740_v62 = vmul.f32 0.1, %v645_v60  ;;  %v770_v3 = vsel %vm706_vm9, %v641_v54, %v738_v59 }
 0x1ae   : > { %v771_v1 = vsel %vm707_vm10, %v643_v57, %v739_v61 }
 0x1af   : > { %v648_v2 = vpop.f32.mrb[12].mxu0  ;;  %v772_v4 = vsel %vm708_vm11, %v645_v60, %v740_v62  ;;  %v797_v5 = vpack.c.bf16 %v771_v1, %v769_v63 }
 0x1b0   : > { %v649_v6 = vadd.f32 %v648_v2, %v2867_v13  ;;  %v650_v7 = vpop.f32.mrb[13].mxu0  ;;  %v798_v8 = vpack.c.bf16 %v772_v4, %v770_v3 }
 0x1b1   : > { %v651_v9 = vadd.f32 %v650_v7, %v2870_v14  ;;  %v652_v11 = vpop.f32.mrb[14].mxu0 }
 0x1b2   : > { %v741_v15 = vmul.f32 0.1, %v649_v6  ;;  %v653_v16 = vadd.f32 %v652_v11, %v2867_v13  ;;  %v654_v17 = vpop.f32.mrb[15].mxu0  ;;  %1065 = vmatprep.mubr.bf16.mxu1 %v798_v8  ;;  %vm709_vm12 = vcmp.gt.f32.partialorder %v649_v6, 0.0 }
 0x1b3   : > { %v742_v18 = vmul.f32 0.1, %v651_v9  ;;  %v655_v19 = vadd.f32 %v654_v17, %v2870_v14  ;;  %1066 = vmatmul.mubr.bf16.gmra.mrb[8].mxu1 %v797_v5  ;;  %vm710_vm13 = vcmp.gt.f32.partialorder %v651_v9, 0.0 }
 0x1b4   : > { %vm711_vm14 = vcmp.gt.f32.partialorder %v653_v16, 0.0  ;;  %v743_v20 = vmul.f32 0.1, %v653_v16  ;;  %v773_v22 = vsel %vm709_vm12, %v649_v6, %v741_v15 }
 0x1b5   : > { %vm712_vm15 = vcmp.gt.f32.partialorder %v655_v19, 0.0  ;;  %v744_v21 = vmul.f32 0.1, %v655_v19  ;;  %v774_v25 = vsel %vm710_vm13, %v651_v9, %v742_v18 }
 0x1b6   : > { %v775_v23 = vsel %vm711_vm14, %v653_v16, %v743_v20 }
 0x1b7   : > { %v658_v24 = vpop.f32.mrb[16].mxu0  ;;  %v776_v26 = vsel %vm712_vm15, %v655_v19, %v744_v21  ;;  %v799_v27 = vpack.c.bf16 %v775_v23, %v773_v22 }
 0x1b8   : > { %v659_v28 = vadd.f32 %v658_v24, %v2867_v13  ;;  %v660_v29 = vpop.f32.mrb[17].mxu0  ;;  %v800_v30 = vpack.c.bf16 %v776_v26, %v774_v25 }
 0x1b9   : > { %v661_v31 = vadd.f32 %v660_v29, %v2870_v14  ;;  %v662_v32 = vpop.f32.mrb[18].mxu0 }
 0x1ba   : > { %v745_v33 = vmul.f32 0.1, %v659_v28  ;;  %v663_v34 = vadd.f32 %v662_v32, %v2867_v13  ;;  %v664_v35 = vpop.f32.mrb[19].mxu0  ;;  %1075 = vmatprep.mubr.bf16.mxu1 %v800_v30  ;;  %vm713_vm0 = vcmp.gt.f32.partialorder %v659_v28, 0.0 }
 0x1bb   : > { %v746_v36 = vmul.f32 0.1, %v661_v31  ;;  %v665_v37 = vadd.f32 %v664_v35, %v2870_v14  ;;  %1076 = vmatmul.mubr.bf16.gmra.mrb[12].mxu1 %v799_v27  ;;  %vm714_vm1 = vcmp.gt.f32.partialorder %v661_v31, 0.0 }
 0x1bc   : > { %vm715_vm2 = vcmp.gt.f32.partialorder %v663_v34, 0.0  ;;  %v747_v38 = vmul.f32 0.1, %v663_v34  ;;  %v777_v40 = vsel %vm713_vm0, %v659_v28, %v745_v33 }
 0x1bd   : > { %vm716_vm3 = vcmp.gt.f32.partialorder %v665_v37, 0.0  ;;  %v748_v39 = vmul.f32 0.1, %v665_v37  ;;  %v778_v43 = vsel %vm714_vm1, %v661_v31, %v746_v36 }
 0x1be   : > { %v779_v41 = vsel %vm715_vm2, %v663_v34, %v747_v38 }
 0x1bf   : > { %v668_v42 = vpop.f32.mrb[20].mxu0  ;;  %v780_v44 = vsel %vm716_vm3, %v665_v37, %v748_v39  ;;  %v801_v45 = vpack.c.bf16 %v779_v41, %v777_v40  ;;  %v2289_v41 = vld [vmem:[#allocation8 + $0x38] sm:$0xff]  }
 0x1c0   : > { %v669_v46 = vadd.f32 %v668_v42, %v2867_v13  ;;  %v670_v47 = vpop.f32.mrb[21].mxu0  ;;  %v802_v48 = vpack.c.bf16 %v780_v44, %v778_v43  ;;  %v2290_v42 = vld [vmem:[#allocation10] ss:$8 sps:$4 sm:$0xff]   ;;  %v2295_v43 = vld [vmem:[#allocation10 + $0x14] ss:$8 sps:$4 sm:$0xff]  }
 0x1c1   : > { %v671_v49 = vadd.f32 %v670_v47, %v2870_v14  ;;  %v672_v50 = vpop.f32.mrb[22].mxu0  ;;  %v2905_v44 = vld [vmem:[#allocation10 + $0x10] ss:$8 sps:$4 sm:$0xff]   ;;  %v2913_v47 = vld [vmem:[#allocation10 + $0x34] ss:$8 sps:$4 sm:$0xff]  }
 0x1c2   : > { %v749_v51 = vmul.f32 0.1, %v669_v46  ;;  %v673_v52 = vadd.f32 %v672_v50, %v2867_v13  ;;  %v674_v53 = vpop.f32.mrb[23].mxu0  ;;  %1085 = vmatprep.mubr.bf16.mxu1 %v802_v48  ;;  %vm717_vm4 = vcmp.gt.f32.partialorder %v669_v46, 0.0  ;;  %v2917_v48 = vld [vmem:[#allocation10 + $0x30] ss:$8 sps:$4 sm:$0xff]  }
 0x1c3   : > { %v750_v54 = vmul.f32 0.1, %v671_v49  ;;  %v675_v55 = vadd.f32 %v674_v53, %v2870_v14  ;;  %1086 = vmatmul.mubr.bf16.gmra.mrb[16].mxu1 %v801_v45  ;;  %vm718_vm5 = vcmp.gt.f32.partialorder %v671_v49, 0.0  ;;  %v2907_v45 = vld [vmem:[#allocation10 + $0x24] ss:$8 sps:$4 sm:$0xff]  }
 0x1c4   : > { %vm719_vm6 = vcmp.gt.f32.partialorder %v673_v52, 0.0  ;;  %v751_v56 = vmul.f32 0.1, %v673_v52  ;;  %v781_v58 = vsel %vm717_vm4, %v669_v46, %v749_v51  ;;  %v2911_v46 = vld [vmem:[#allocation10 + $0x20] ss:$8 sps:$4 sm:$0xff]  }
 0x1c5   : > { %vm720_vm7 = vcmp.gt.f32.partialorder %v675_v55, 0.0  ;;  %v752_v57 = vmul.f32 0.1, %v675_v55  ;;  %v782_v61 = vsel %vm718_vm5, %v671_v49, %v750_v54  ;;  %v2919_v49 = vld [vmem:[#allocation10 + $0x44] ss:$8 sps:$4 sm:$0xff]  }
 0x1c6   : > { %v783_v59 = vsel %vm719_vm6, %v673_v52, %v751_v56  ;;  %v2923_v50 = vld [vmem:[#allocation10 + $0x40] ss:$8 sps:$4 sm:$0xff]  }
 0x1c7   : > { %v678_v60 = vpop.f32.mrb[24].mxu0  ;;  %v784_v62 = vsel %vm720_vm7, %v675_v55, %v752_v57  ;;  %v803_v63 = vpack.c.bf16 %v783_v59, %v781_v58  ;;  %v841_v51 = vld [vmem:[%s3133_s4] sm:$0x3] }
 0x1c8   : > { %v679_v1 = vadd.f32 %v678_v60, %v2867_v13  ;;  %v680_v2 = vpop.f32.mrb[25].mxu0  ;;  %v804_v3 = vpack.c.bf16 %v784_v62, %v782_v61  ;;  %v2930_v52 = vrot.slane %v841_v51, %v2859_v10  ;;  %v2933_v53 = vrot.slane %v841_v51, %v2864_v12 }
 0x1c9   : > { %v681_v4 = vadd.f32 %v680_v2, %v2870_v14  ;;  %v682_v5 = vpop.f32.mrb[26].mxu0 }
 0x1ca   : > { %v753_v6 = vmul.f32 0.1, %v679_v1  ;;  %v683_v7 = vadd.f32 %v682_v5, %v2867_v13  ;;  %v684_v8 = vpop.f32.mrb[27].mxu0  ;;  %1095 = vmatprep.mubr.bf16.mxu1 %v804_v3  ;;  %vm721_vm8 = vcmp.gt.f32.partialorder %v679_v1, 0.0 }
 0x1cb   : > { %v754_v9 = vmul.f32 0.1, %v681_v4  ;;  %v685_v11 = vadd.f32 %v684_v8, %v2870_v14  ;;  %1096 = vmatmul.mubr.bf16.gmra.mrb[20].mxu1 %v803_v63  ;;  %vm722_vm9 = vcmp.gt.f32.partialorder %v681_v4, 0.0 }
 0x1cc   : > { %vm723_vm10 = vcmp.gt.f32.partialorder %v683_v7, 0.0  ;;  %v755_v15 = vmul.f32 0.1, %v683_v7  ;;  %v785_v17 = vsel %vm721_vm8, %v679_v1, %v753_v6 }
 0x1cd   : > { %vm724_vm11 = vcmp.gt.f32.partialorder %v685_v11, 0.0  ;;  %v756_v16 = vmul.f32 0.1, %v685_v11  ;;  %v786_v20 = vsel %vm722_vm9, %v681_v4, %v754_v9 }
 0x1ce   : > { %v787_v18 = vsel %vm723_vm10, %v683_v7, %v755_v15 }
 0x1cf   : > { %v688_v19 = vpop.f32.mrb[28].mxu0  ;;  %v788_v21 = vsel %vm724_vm11, %v685_v11, %v756_v16  ;;  %v805_v22 = vpack.c.bf16 %v787_v18, %v785_v17 }
 0x1d0   : > { %v689_v23 = vadd.f32 %v688_v19, %v2867_v13  ;;  %v690_v24 = vpop.f32.mrb[29].mxu0  ;;  %v806_v25 = vpack.c.bf16 %v788_v21, %v786_v20 }
 0x1d1   : > { %v691_v26 = vadd.f32 %v690_v24, %v2870_v14  ;;  %v692_v27 = vpop.f32.mrb[30].mxu0 }
 0x1d2   : > { %v757_v28 = vmul.f32 0.1, %v689_v23  ;;  %v693_v29 = vadd.f32 %v692_v27, %v2867_v13  ;;  %v694_v30 = vpop.f32.mrb[31].mxu0  ;;  %1105 = vmatprep.mubr.bf16.mxu1 %v806_v25  ;;  %vm725_vm12 = vcmp.gt.f32.partialorder %v689_v23, 0.0  ;;  %v2288_v13 = vld [vmem:[#allocation8 + $0x78] sm:$0xff]  }
 0x1d3   : > { %v758_v31 = vmul.f32 0.1, %v691_v26  ;;  %v695_v32 = vadd.f32 %v694_v30, %v2870_v14  ;;  %1106 = vmatmul.mubr.bf16.gmra.mrb[24].mxu1 %v805_v22  ;;  %vm726_vm13 = vcmp.gt.f32.partialorder %v691_v26, 0.0  ;;  %2034 = vmatprep.subr.bf16.mxu0 %v2288_v13  ;;  %v2292_v14 = vld [vmem:[#allocation10 + $0x4] ss:$8 sps:$4 sm:$0xff]  }
 0x1d4   : > { %vm727_vm14 = vcmp.gt.f32.partialorder %v693_v29, 0.0  ;;  %v759_v33 = vmul.f32 0.1, %v693_v29  ;;  %v789_v35 = vsel %vm725_vm12, %v689_v23, %v757_v28  ;;  %2035 = vmatpush3.bf16.msra.mxu0 %v2289_v41  ;;  %2084 = vmatprep.subr.bf16.mxu1 %v2292_v14 }
 0x1d5   : > { %vm728_vm15 = vcmp.gt.f32.partialorder %v695_v32, 0.0  ;;  %v760_v34 = vmul.f32 0.1, %v695_v32  ;;  %v790_v37 = vsel %vm726_vm13, %v691_v26, %v758_v31  ;;  %1634 = vmatprep.subr.bf16.mxu0 %v2292_v14  ;;  %2092 = vmatpush1.bf16.msra.mxu1 %v2290_v42 }
 0x1d6   : > { %v791_v36 = vsel %vm727_vm14, %v693_v29, %v759_v33  ;;  %2085 = vmatprep.subr.bf16.mxu1 %v2295_v43 }
 0x1d7   : > { %v792_v38 = vsel %vm728_vm15, %v695_v32, %v760_v34  ;;  %v807_v39 = vpack.c.bf16 %v791_v36, %v789_v35 }
 0x1d8   : > { %v808_v40 = vpack.c.bf16 %v792_v38, %v790_v37 }
 0x1d9   : > { %2093 = vmatpush1.bf16.msra.mxu1 %v2905_v44 }
 0x1da   : > { %1115 = vmatprep.mubr.bf16.mxu1 %v808_v40  ;;  %2086 = vmatprep.subr.bf16.mxu1 %v2907_v45 }
 0x1db   : > { %1116 = vmatmul.mubr.bf16.gmra.mrb[28].mxu1 %v807_v39 }
 0x1dc   : > { %1686 = vmatprep.mubr.bf16.mxu1 %v2541_v0 }
 0x1dd   : > { %2094 = vmatpush1.bf16.msra.mxu1 %v2911_v46 }
 0x1de   : > { %2087 = vmatprep.subr.bf16.mxu1 %v2913_v47 }
 0x1e1   : > { %2095 = vmatpush1.bf16.msra.mxu1 %v2917_v48 }
 0x1e2   : > { %2088 = vmatprep.subr.bf16.mxu1 %v2919_v49 }
 0x1e5   : > { %2096 = vmatpush1.bf16.msra.mxu1 %v2923_v50 }
 0x276   : > { %v1047_v54 = vpop.f32.mrb[0].mxu1 }
 0x277   : > { %v1048_v55 = vadd.f32 %v1047_v54, %v2930_v52  ;;  %v1049_v56 = vpop.f32.mrb[1].mxu1 }
 0x278   : > { %v1050_v57 = vadd.f32 %v1049_v56, %v2933_v53  ;;  %v1051_v58 = vpop.f32.mrb[2].mxu1 }
 0x279   : > { %v1158_v59 = vmul.f32 0.1, %v1048_v55  ;;  %v1052_v60 = vadd.f32 %v1051_v58, %v2930_v52  ;;  %v1053_v61 = vpop.f32.mrb[3].mxu1  ;;  %vm1126_vm0 = vcmp.gt.f32.partialorder %v1048_v55, 0.0 }
 0x27a   : > { %v1159_v62 = vmul.f32 0.1, %v1050_v57  ;;  %v1054_v63 = vadd.f32 %v1053_v61, %v2933_v53  ;;  %vm1127_vm1 = vcmp.gt.f32.partialorder %v1050_v57, 0.0 }
 0x27b   : > { %vm1128_vm2 = vcmp.gt.f32.partialorder %v1052_v60, 0.0  ;;  %v1160_v1 = vmul.f32 0.1, %v1052_v60  ;;  %v1190_v3 = vsel %vm1126_vm0, %v1048_v55, %v1158_v59 }
 0x27c   : > { %vm1129_vm3 = vcmp.gt.f32.partialorder %v1054_v63, 0.0  ;;  %v1161_v2 = vmul.f32 0.1, %v1054_v63  ;;  %v1191_v7 = vsel %vm1127_vm1, %v1050_v57, %v1159_v62 }
 0x27d   : > { %v1192_v4 = vsel %vm1128_vm2, %v1052_v60, %v1160_v1 }
 0x27e   : > { %v1222_v5 = vpack.c.bf16 %v1192_v4, %v1190_v3  ;;  %v1057_v6 = vpop.f32.mrb[4].mxu1  ;;  %v1193_v8 = vsel %vm1129_vm3, %v1054_v63, %v1161_v2 }
 0x27f   : > { %v1058_v9 = vadd.f32 %v1057_v6, %v2930_v52  ;;  %v1059_v11 = vpop.f32.mrb[5].mxu1  ;;  %v1223_v15 = vpack.c.bf16 %v1193_v8, %v1191_v7 }
 0x280   : > { %v1060_v16 = vadd.f32 %v1059_v11, %v2933_v53  ;;  %v1061_v17 = vpop.f32.mrb[6].mxu1 }
 0x281   : > { %v1162_v18 = vmul.f32 0.1, %v1058_v9  ;;  %v1062_v19 = vadd.f32 %v1061_v17, %v2930_v52  ;;  %v1063_v20 = vpop.f32.mrb[7].mxu1  ;;  %1405 = vmatprep.mubr.bf16.mxu0 %v1223_v15  ;;  %vm1130_vm4 = vcmp.gt.f32.partialorder %v1058_v9, 0.0 }
 0x282   : > { %v1163_v21 = vmul.f32 0.1, %v1060_v16  ;;  %v1064_v22 = vadd.f32 %v1063_v20, %v2933_v53  ;;  %1406 = vmatmul.mubr.bf16.vlgmr.msra.gmra.mrb[32].mxu0 %v1222_v5  ;;  %vm1131_vm5 = vcmp.gt.f32.partialorder %v1060_v16, 0.0 }
 0x283   : > { %vm1132_vm6 = vcmp.gt.f32.partialorder %v1062_v19, 0.0  ;;  %v1164_v23 = vmul.f32 0.1, %v1062_v19  ;;  %1635 = vmatpush1.bf16.msra.mxu0 %v2290_v42  ;;  %v1194_v25 = vsel %vm1130_vm4, %v1058_v9, %v1162_v18 }
 0x284   : > { %vm1133_vm7 = vcmp.gt.f32.partialorder %v1064_v22, 0.0  ;;  %v1165_v24 = vmul.f32 0.1, %v1064_v22  ;;  %1636 = vmatprep.subr.bf16.mxu0 %v2295_v43  ;;  %v1195_v28 = vsel %vm1131_vm5, %v1060_v16, %v1163_v21 }
 0x285   : > { %v1196_v26 = vsel %vm1132_vm6, %v1062_v19, %v1164_v23 }
 0x286   : > { %v1067_v27 = vpop.f32.mrb[8].mxu1  ;;  %v1197_v29 = vsel %vm1133_vm7, %v1064_v22, %v1165_v24  ;;  %v1224_v30 = vpack.c.bf16 %v1196_v26, %v1194_v25 }
 0x287   : > { %v1068_v31 = vadd.f32 %v1067_v27, %v2930_v52  ;;  %v1069_v32 = vpop.f32.mrb[9].mxu1  ;;  %v1225_v33 = vpack.c.bf16 %v1197_v29, %v1195_v28  ;;  %1637 = vmatpush1.bf16.msra.mxu0 %v2905_v44 }
 0x288   : > { %v1070_v34 = vadd.f32 %v1069_v32, %v2933_v53  ;;  %v1071_v35 = vpop.f32.mrb[10].mxu1  ;;  %1638 = vmatprep.subr.bf16.mxu0 %v2907_v45 }
 0x289   : > { %v1166_v36 = vmul.f32 0.1, %v1068_v31  ;;  %v1072_v37 = vadd.f32 %v1071_v35, %v2930_v52  ;;  %v1073_v38 = vpop.f32.mrb[11].mxu1  ;;  %1413 = vmatprep.mubr.bf16.mxu0 %v1225_v33  ;;  %vm1134_vm8 = vcmp.gt.f32.partialorder %v1068_v31, 0.0 }
 0x28a   : > { %v1167_v39 = vmul.f32 0.1, %v1070_v34  ;;  %v1074_v40 = vadd.f32 %v1073_v38, %v2933_v53  ;;  %1414 = vmatmul.mubr.bf16.gmra.mrb[36].mxu0 %v1224_v30  ;;  %vm1135_vm9 = vcmp.gt.f32.partialorder %v1070_v34, 0.0 }
 0x28b   : > { %vm1136_vm10 = vcmp.gt.f32.partialorder %v1072_v37, 0.0  ;;  %v1168_v13 = vmul.f32 0.1, %v1072_v37  ;;  %1639 = vmatpush1.bf16.msra.mxu0 %v2911_v46  ;;  %v1198_v14 = vsel %vm1134_vm8, %v1068_v31, %v1166_v36 }
 0x28c   : > { %vm1137_vm11 = vcmp.gt.f32.partialorder %v1074_v40, 0.0  ;;  %v1169_v41 = vmul.f32 0.1, %v1074_v40  ;;  %1640 = vmatprep.subr.bf16.mxu0 %v2913_v47  ;;  %v1199_v44 = vsel %vm1135_vm9, %v1070_v34, %v1167_v39 }
 0x28d   : > { %v1200_v42 = vsel %vm1136_vm10, %v1072_v37, %v1168_v13 }
 0x28e   : > { %v1077_v43 = vpop.f32.mrb[12].mxu1  ;;  %v1201_v45 = vsel %vm1137_vm11, %v1074_v40, %v1169_v41  ;;  %v1226_v51 = vpack.c.bf16 %v1200_v42, %v1198_v14 }
 0x28f   : > { %v1078_v54 = vadd.f32 %v1077_v43, %v2930_v52  ;;  %v1079_v55 = vpop.f32.mrb[13].mxu1  ;;  %v1227_v56 = vpack.c.bf16 %v1201_v45, %v1199_v44  ;;  %1641 = vmatpush1.bf16.msra.mxu0 %v2917_v48 }
 0x290   : > { %v1080_v57 = vadd.f32 %v1079_v55, %v2933_v53  ;;  %v1081_v58 = vpop.f32.mrb[14].mxu1  ;;  %1642 = vmatprep.subr.bf16.mxu0 %v2919_v49 }
 0x291   : > { %v1170_v46 = vmul.f32 0.1, %v1078_v54  ;;  %v1082_v47 = vadd.f32 %v1081_v58, %v2930_v52  ;;  %v1083_v59 = vpop.f32.mrb[15].mxu1  ;;  %1421 = vmatprep.mubr.bf16.mxu0 %v1227_v56  ;;  %vm1138_vm12 = vcmp.gt.f32.partialorder %v1078_v54, 0.0 }
 0x292   : > { %v1171_v60 = vmul.f32 0.1, %v1080_v57  ;;  %v1084_v61 = vadd.f32 %v1083_v59, %v2933_v53  ;;  %1422 = vmatmul.mubr.bf16.gmra.mrb[40].mxu0 %v1226_v51  ;;  %vm1139_vm13 = vcmp.gt.f32.partialorder %v1080_v57, 0.0 }
 0x293   : > { %vm1140_vm14 = vcmp.gt.f32.partialorder %v1082_v47, 0.0  ;;  %v1172_v62 = vmul.f32 0.1, %v1082_v47  ;;  %1643 = vmatpush1.bf16.msra.mxu0 %v2923_v50  ;;  %v1202_v63 = vsel %vm1138_vm12, %v1078_v54, %v1170_v46 }
 0x294   : > { %vm1141_vm15 = vcmp.gt.f32.partialorder %v1084_v61, 0.0  ;;  %v1173_v48 = vmul.f32 0.1, %v1084_v61  ;;  %v1203_v2 = vsel %vm1139_vm13, %v1080_v57, %v1171_v60 }
 0x295   : > { %v1204_v1 = vsel %vm1140_vm14, %v1082_v47, %v1172_v62 }
 0x296   : > { %v1087_v49 = vpop.f32.mrb[16].mxu1  ;;  %v1205_v3 = vsel %vm1141_vm15, %v1084_v61, %v1173_v48  ;;  %v1228_v4 = vpack.c.bf16 %v1204_v1, %v1202_v63 }
 0x297   : > { %v1088_v5 = vadd.f32 %v1087_v49, %v2930_v52  ;;  %v1089_v6 = vpop.f32.mrb[17].mxu1  ;;  %v1229_v7 = vpack.c.bf16 %v1205_v3, %v1203_v2 }
 0x298   : > { %v1090_v8 = vadd.f32 %v1089_v6, %v2933_v53  ;;  %v1091_v9 = vpop.f32.mrb[18].mxu1 }
 0x299   : > { %v1174_v11 = vmul.f32 0.1, %v1088_v5  ;;  %v1092_v15 = vadd.f32 %v1091_v9, %v2930_v52  ;;  %v1093_v16 = vpop.f32.mrb[19].mxu1  ;;  %1429 = vmatprep.mubr.bf16.mxu0 %v1229_v7  ;;  %vm1142_vm0 = vcmp.gt.f32.partialorder %v1088_v5, 0.0 }
 0x29a   : > { %v1175_v50 = vmul.f32 0.1, %v1090_v8  ;;  %v1094_v17 = vadd.f32 %v1093_v16, %v2933_v53  ;;  %1430 = vmatmul.mubr.bf16.gmra.mrb[44].mxu0 %v1228_v4  ;;  %vm1143_vm1 = vcmp.gt.f32.partialorder %v1090_v8, 0.0 }
 0x29b   : > { %vm1144_vm2 = vcmp.gt.f32.partialorder %v1092_v15, 0.0  ;;  %v1176_v18 = vmul.f32 0.1, %v1092_v15  ;;  %v1206_v20 = vsel %vm1142_vm0, %v1088_v5, %v1174_v11 }
 0x29c   : > { %vm1145_vm3 = vcmp.gt.f32.partialorder %v1094_v17, 0.0  ;;  %v1177_v19 = vmul.f32 0.1, %v1094_v17  ;;  %v1207_v23 = vsel %vm1143_vm1, %v1090_v8, %v1175_v50 }
 0x29d   : > { %v1208_v21 = vsel %vm1144_vm2, %v1092_v15, %v1176_v18 }
 0x29e   : > { %v1097_v22 = vpop.f32.mrb[20].mxu1  ;;  %v1209_v24 = vsel %vm1145_vm3, %v1094_v17, %v1177_v19  ;;  %v1230_v25 = vpack.c.bf16 %v1208_v21, %v1206_v20  ;;  %v2305_v21 = vld [vmem:[#allocation10 + $0x50] ss:$8 sps:$4 sm:$0xff]  }
 0x29f   : > { %v1098_v26 = vadd.f32 %v1097_v22, %v2930_v52  ;;  %v1099_v27 = vpop.f32.mrb[21].mxu1  ;;  %v1231_v28 = vpack.c.bf16 %v1209_v24, %v1207_v23  ;;  %v2308_v22 = vld [vmem:[#allocation10 + $0x60] ss:$8 sps:$4 sm:$0xff]   ;;  %v2313_v23 = vld [vmem:[#allocation10 + $0x74] ss:$8 sps:$4 sm:$0xff]  }
 0x2a0   : > { %v1100_v29 = vadd.f32 %v1099_v27, %v2933_v53  ;;  %v1101_v30 = vpop.f32.mrb[22].mxu1  ;;  %v2311_v24 = vld [vmem:[#allocation10 + $0x70] ss:$8 sps:$4 sm:$0xff]  }
 0x2a1   : > { %v1178_v31 = vmul.f32 0.1, %v1098_v26  ;;  %v1102_v32 = vadd.f32 %v1101_v30, %v2930_v52  ;;  %v1103_v33 = vpop.f32.mrb[23].mxu1  ;;  %1437 = vmatprep.mubr.bf16.mxu0 %v1231_v28  ;;  %vm1146_vm4 = vcmp.gt.f32.partialorder %v1098_v26, 0.0 }
 0x2a2   : > { %v1179_v34 = vmul.f32 0.1, %v1100_v29  ;;  %v1104_v35 = vadd.f32 %v1103_v33, %v2933_v53  ;;  %1438 = vmatmul.mubr.bf16.gmra.mrb[48].mxu0 %v1230_v25  ;;  %vm1147_vm5 = vcmp.gt.f32.partialorder %v1100_v29, 0.0 }
 0x2a3   : > { %vm1148_vm6 = vcmp.gt.f32.partialorder %v1102_v32, 0.0  ;;  %v1180_v36 = vmul.f32 0.1, %v1102_v32  ;;  %v1210_v38 = vsel %vm1146_vm4, %v1098_v26, %v1178_v31  ;;  %v2978_v26 = vld [vmem:[%s3135_s6] ss:$0 sm:$0xff] }
 0x2a4   : > { %vm1149_vm7 = vcmp.gt.f32.partialorder %v1104_v35, 0.0  ;;  %v1181_v37 = vmul.f32 0.1, %v1104_v35  ;;  %v1211_v13 = vsel %vm1147_vm5, %v1100_v29, %v1179_v34 }
 0x2a5   : > { %v1212_v39 = vsel %vm1148_vm6, %v1102_v32, %v1180_v36 }
 0x2a6   : > { %v1107_v40 = vpop.f32.mrb[24].mxu1  ;;  %v1213_v41 = vsel %vm1149_vm7, %v1104_v35, %v1181_v37  ;;  %v1232_v14 = vpack.c.bf16 %v1212_v39, %v1210_v38 }
 0x2a7   : > { %v1108_v42 = vadd.f32 %v1107_v40, %v2930_v52  ;;  %v1109_v43 = vpop.f32.mrb[25].mxu1  ;;  %v1233_v44 = vpack.c.bf16 %v1213_v41, %v1211_v13 }
 0x2a8   : > { %v1110_v45 = vadd.f32 %v1109_v43, %v2933_v53  ;;  %v1111_v51 = vpop.f32.mrb[26].mxu1 }
 0x2a9   : > { %v1182_v54 = vmul.f32 0.1, %v1108_v42  ;;  %v1112_v55 = vadd.f32 %v1111_v51, %v2930_v52  ;;  %v1113_v56 = vpop.f32.mrb[27].mxu1  ;;  %1445 = vmatprep.mubr.bf16.mxu0 %v1233_v44  ;;  %vm1150_vm8 = vcmp.gt.f32.partialorder %v1108_v42, 0.0 }
 0x2aa   : > { %v1183_v57 = vmul.f32 0.1, %v1110_v45  ;;  %v1114_v58 = vadd.f32 %v1113_v56, %v2933_v53  ;;  %1446 = vmatmul.mubr.bf16.gmra.mrb[52].mxu0 %v1232_v14  ;;  %vm1151_vm9 = vcmp.gt.f32.partialorder %v1110_v45, 0.0 }
 0x2ab   : > { %vm1152_vm10 = vcmp.gt.f32.partialorder %v1112_v55, 0.0  ;;  %v1184_v46 = vmul.f32 0.1, %v1112_v55  ;;  %v1214_v59 = vsel %vm1150_vm8, %v1108_v42, %v1182_v54 }
 0x2ac   : > { %vm1153_vm11 = vcmp.gt.f32.partialorder %v1114_v58, 0.0  ;;  %v1185_v47 = vmul.f32 0.1, %v1114_v58  ;;  %v1215_v62 = vsel %vm1151_vm9, %v1110_v45, %v1183_v57 }
 0x2ad   : > { %v1216_v60 = vsel %vm1152_vm10, %v1112_v55, %v1184_v46 }
 0x2ae   : > { %v1117_v61 = vpop.f32.mrb[28].mxu1  ;;  %v1217_v48 = vsel %vm1153_vm11, %v1114_v58, %v1185_v47  ;;  %v1234_v63 = vpack.c.bf16 %v1216_v60, %v1214_v59 }
 0x2af   : > { %v1118_v1 = vadd.f32 %v1117_v61, %v2930_v52  ;;  %v1119_v49 = vpop.f32.mrb[29].mxu1  ;;  %v1235_v2 = vpack.c.bf16 %v1217_v48, %v1215_v62 }
 0x2b0   : > { %v1120_v3 = vadd.f32 %v1119_v49, %v2933_v53  ;;  %v1121_v4 = vpop.f32.mrb[30].mxu1 }
 0x2b1   : > { %v1186_v5 = vmul.f32 0.1, %v1118_v1  ;;  %v1122_v6 = vadd.f32 %v1121_v4, %v2930_v52  ;;  %v1123_v7 = vpop.f32.mrb[31].mxu1  ;;  %1453 = vmatprep.mubr.bf16.mxu0 %v1235_v2  ;;  %vm1154_vm12 = vcmp.gt.f32.partialorder %v1118_v1, 0.0  ;;  %v2307_v52 = vld [vmem:[#allocation10 + $0x54] ss:$8 sps:$4 sm:$0xff]  }
 0x2b2   : > { %v1187_v8 = vmul.f32 0.1, %v1120_v3  ;;  %v1124_v9 = vadd.f32 %v1123_v7, %v2933_v53  ;;  %1454 = vmatmul.mubr.bf16.gmra.mrb[56].mxu0 %v1234_v63  ;;  %vm1155_vm13 = vcmp.gt.f32.partialorder %v1120_v3, 0.0  ;;  %1644 = vmatprep.subr.bf16.mxu0 %v2307_v52  ;;  %v2310_v53 = vld [vmem:[#allocation10 + $0x64] ss:$8 sps:$4 sm:$0xff]  }
 0x2b3   : > { %vm1156_vm14 = vcmp.gt.f32.partialorder %v1122_v6, 0.0  ;;  %v1188_v11 = vmul.f32 0.1, %v1122_v6  ;;  %v1218_v16 = vsel %vm1154_vm12, %v1118_v1, %v1186_v5  ;;  %2089 = vmatprep.subr.bf16.mxu1 %v2307_v52  ;;  %1645 = vmatpush1.bf16.msra.mxu0 %v2305_v21 }
 0x2b4   : > { %vm1157_vm15 = vcmp.gt.f32.partialorder %v1124_v9, 0.0  ;;  %v1189_v15 = vmul.f32 0.1, %v1124_v9  ;;  %v1219_v17 = vsel %vm1155_vm13, %v1120_v3, %v1187_v8  ;;  %2097 = vmatpush1.bf16.msra.mxu1 %v2305_v21  ;;  %1646 = vmatprep.subr.bf16.mxu0 %v2310_v53 }
 0x2b5   : > { %v1220_v50 = vsel %vm1156_vm14, %v1122_v6, %v1188_v11  ;;  %2090 = vmatprep.subr.bf16.mxu1 %v2310_v53 }
 0x2b6   : > { %v1221_v18 = vsel %vm1157_vm15, %v1124_v9, %v1189_v15  ;;  %v1236_v19 = vpack.c.bf16 %v1220_v50, %v1218_v16 }
 0x2b7   : > { %v1237_v20 = vpack.c.bf16 %v1221_v18, %v1219_v17  ;;  %1647 = vmatpush1.bf16.msra.mxu0 %v2308_v22 }
 0x2b8   : > { %2098 = vmatpush1.bf16.msra.mxu1 %v2308_v22  ;;  %1648 = vmatprep.subr.bf16.mxu0 %v2313_v23 }
 0x2b9   : > { %1461 = vmatprep.mubr.bf16.mxu0 %v1237_v20  ;;  %2091 = vmatprep.subr.bf16.mxu1 %v2313_v23 }
 0x2ba   : > { %1462 = vmatmul.mubr.bf16.gmra.mrb[60].mxu0 %v1236_v19 }
 0x2bb   : > { %1666 = vmatprep.mubr.bf16.mxu0 %v2541_v0  ;;  %1649 = vmatpush1.bf16.msra.mxu0 %v2311_v24 }
 0x2bc   : > { %2099 = vmatpush1.bf16.msra.mxu1 %v2311_v24 }
 0x355   : > { %v2036_v25 = vpop.f32.mrb[32].mxu0 }
 0x356   : > { %v2037_v27 = vpop.f32.mrb[33].mxu0 }
 0x357   : > { %v2038_v28 = vadd.f32 %v2037_v27, %v2036_v25  ;;  %v2039_v29 = vpop.f32.mrb[34].mxu0 }
 0x358   : > { %v2040_v30 = vpop.f32.mrb[35].mxu0 }
 0x359   : > { %v1408_v31 = vadd.f32 %v2038_v28, %v2978_v26  ;;  %v2041_v32 = vadd.f32 %v2040_v30, %v2039_v29 }
 0x35b   : > { %v1486_v33 = vmul.f32 0.1, %v1408_v31  ;;  %v1411_v34 = vadd.f32 %v2041_v32, %v2978_v26  ;;  %vm1470_vm0 = vcmp.gt.f32.partialorder %v1408_v31, 0.0 }
 0x35d   : > { %vm1471_vm1 = vcmp.gt.f32.partialorder %v1411_v34, 0.0  ;;  %v1487_v35 = vmul.f32 0.1, %v1411_v34  ;;  %v2042_v36 = vpop.f32.mrb[36].mxu0  ;;  %v1502_v38 = vsel %vm1470_vm0, %v1408_v31, %v1486_v33 }
 0x35e   : > { %v2043_v37 = vpop.f32.mrb[37].mxu0 }
 0x35f   : > { %v1503_v39 = vsel %vm1471_vm1, %v1411_v34, %v1487_v35  ;;  %v2044_v40 = vadd.f32 %v2043_v37, %v2042_v36  ;;  %v2045_v13 = vpop.f32.mrb[38].mxu0 }
 0x360   : > { %v1518_v41 = vpack.c.bf16 %v1503_v39, %v1502_v38  ;;  %v2046_v14 = vpop.f32.mrb[39].mxu0 }
 0x361   : > { %v1416_v42 = vadd.f32 %v2044_v40, %v2978_v26  ;;  %v2047_v43 = vadd.f32 %v2046_v14, %v2045_v13 }
 0x362   : > { %1667 = vmatmul.mubr.bf16.vlgmr.msra.gmra.mrb[64].mxu0 %v1518_v41 }
 0x363   : > { %v1488_v44 = vmul.f32 0.1, %v1416_v42  ;;  %v1419_v45 = vadd.f32 %v2047_v43, %v2978_v26  ;;  %1676 = vmatprep.mubr.bf16.mxu0 %v2541_v0  ;;  %vm1472_vm2 = vcmp.gt.f32.partialorder %v1416_v42, 0.0 }
 0x365   : > { %vm1473_vm3 = vcmp.gt.f32.partialorder %v1419_v45, 0.0  ;;  %v1489_v51 = vmul.f32 0.1, %v1419_v45  ;;  %v2048_v54 = vpop.f32.mrb[40].mxu0  ;;  %v1504_v58 = vsel %vm1472_vm2, %v1416_v42, %v1488_v44 }
 0x366   : > { %v2049_v55 = vpop.f32.mrb[41].mxu0 }
 0x367   : > { %v2050_v56 = vadd.f32 %v2049_v55, %v2048_v54  ;;  %v2051_v57 = vpop.f32.mrb[42].mxu0  ;;  %v1505_v46 = vsel %vm1473_vm3, %v1419_v45, %v1489_v51 }
 0x368   : > { %v2052_v47 = vpop.f32.mrb[43].mxu0  ;;  %v1519_v59 = vpack.c.bf16 %v1505_v46, %v1504_v58 }
 0x369   : > { %v1424_v60 = vadd.f32 %v2050_v56, %v2978_v26  ;;  %v2053_v61 = vadd.f32 %v2052_v47, %v2051_v57 }
 0x36a   : > { %1677 = vmatmul.mubr.bf16.gmra.mrb[68].mxu0 %v1519_v59 }
 0x36b   : > { %v1490_v62 = vmul.f32 0.1, %v1424_v60  ;;  %v1427_v48 = vadd.f32 %v2053_v61, %v2978_v26  ;;  %vm1474_vm4 = vcmp.gt.f32.partialorder %v1424_v60, 0.0 }
 0x36d   : > { %vm1475_vm5 = vcmp.gt.f32.partialorder %v1427_v48, 0.0  ;;  %v1491_v63 = vmul.f32 0.1, %v1427_v48  ;;  %v2054_v1 = vpop.f32.mrb[44].mxu0  ;;  %v1506_v2 = vsel %vm1474_vm4, %v1424_v60, %v1490_v62 }
 0x36e   : > { %v2055_v49 = vpop.f32.mrb[45].mxu0 }
 0x36f   : > { %v1507_v3 = vsel %vm1475_vm5, %v1427_v48, %v1491_v63  ;;  %v2056_v4 = vadd.f32 %v2055_v49, %v2054_v1  ;;  %v2057_v5 = vpop.f32.mrb[46].mxu0 }
 0x370   : > { %v1520_v6 = vpack.c.bf16 %v1507_v3, %v1506_v2  ;;  %v2058_v7 = vpop.f32.mrb[47].mxu0 }
 0x371   : > { %v1432_v8 = vadd.f32 %v2056_v4, %v2978_v26  ;;  %v2059_v9 = vadd.f32 %v2058_v7, %v2057_v5 }
 0x372   : > { %1687 = vmatmul.mubr.bf16.vlgmr.msra.gmra.mrb[32].mxu1 %v1520_v6 }
 0x373   : > { %v1492_v11 = vmul.f32 0.1, %v1432_v8  ;;  %v1435_v15 = vadd.f32 %v2059_v9, %v2978_v26  ;;  %1696 = vmatprep.mubr.bf16.mxu1 %v2541_v0  ;;  %vm1476_vm6 = vcmp.gt.f32.partialorder %v1432_v8, 0.0 }
 0x375   : > { %vm1477_vm7 = vcmp.gt.f32.partialorder %v1435_v15, 0.0  ;;  %v1493_v16 = vmul.f32 0.1, %v1435_v15  ;;  %v2060_v50 = vpop.f32.mrb[48].mxu0  ;;  %v1508_v20 = vsel %vm1476_vm6, %v1432_v8, %v1492_v11  ;;  %v1542_v8 = vld [vmem:[%s3137_s8] sm:$0x3] }
 0x376   : > { %v2061_v17 = vpop.f32.mrb[49].mxu0  ;;  %v3007_v9 = vrot.slane %v1542_v8, %v2859_v10  ;;  %v3010_v11 = vrot.slane %v1542_v8, %v2864_v12 }
 0x377   : > { %v2062_v18 = vadd.f32 %v2061_v17, %v2060_v50  ;;  %v2063_v19 = vpop.f32.mrb[50].mxu0  ;;  %v1509_v52 = vsel %vm1477_vm7, %v1435_v15, %v1493_v16 }
 0x378   : > { %v2064_v21 = vpop.f32.mrb[51].mxu0  ;;  %v1521_v53 = vpack.c.bf16 %v1509_v52, %v1508_v20 }
 0x379   : > { %v1440_v22 = vadd.f32 %v2062_v18, %v2978_v26  ;;  %v2065_v23 = vadd.f32 %v2064_v21, %v2063_v19 }
 0x37a   : > { %1697 = vmatmul.mubr.bf16.gmra.mrb[36].mxu1 %v1521_v53 }
 0x37b   : > { %v1494_v24 = vmul.f32 0.1, %v1440_v22  ;;  %v1443_v25 = vadd.f32 %v2065_v23, %v2978_v26  ;;  %1706 = vmatprep.mubr.bf16.mxu1 %v2541_v0  ;;  %vm1478_vm8 = vcmp.gt.f32.partialorder %v1440_v22, 0.0 }
 0x37d   : > { %vm1479_vm9 = vcmp.gt.f32.partialorder %v1443_v25, 0.0  ;;  %v1495_v27 = vmul.f32 0.1, %v1443_v25  ;;  %v2066_v28 = vpop.f32.mrb[52].mxu0  ;;  %v1510_v32 = vsel %vm1478_vm8, %v1440_v22, %v1494_v24 }
 0x37e   : > { %v2067_v29 = vpop.f32.mrb[53].mxu0 }
 0x37f   : > { %v2068_v30 = vadd.f32 %v2067_v29, %v2066_v28  ;;  %v2069_v31 = vpop.f32.mrb[54].mxu0  ;;  %v1511_v33 = vsel %vm1479_vm9, %v1443_v25, %v1495_v27 }
 0x380   : > { %v2070_v34 = vpop.f32.mrb[55].mxu0  ;;  %v1522_v35 = vpack.c.bf16 %v1511_v33, %v1510_v32 }
 0x381   : > { %v1448_v36 = vadd.f32 %v2068_v30, %v2978_v26  ;;  %v2071_v37 = vadd.f32 %v2070_v34, %v2069_v31 }
 0x382   : > { %1707 = vmatmul.mubr.bf16.gmra.mrb[40].mxu1 %v1522_v35 }
 0x383   : > { %v1496_v38 = vmul.f32 0.1, %v1448_v36  ;;  %v1451_v39 = vadd.f32 %v2071_v37, %v2978_v26  ;;  %1716 = vmatprep.mubr.bf16.mxu1 %v2541_v0  ;;  %vm1480_vm10 = vcmp.gt.f32.partialorder %v1448_v36, 0.0 }
 0x385   : > { %vm1481_vm11 = vcmp.gt.f32.partialorder %v1451_v39, 0.0  ;;  %v1497_v40 = vmul.f32 0.1, %v1451_v39  ;;  %v2072_v13 = vpop.f32.mrb[56].mxu0  ;;  %v1512_v43 = vsel %vm1480_vm10, %v1448_v36, %v1496_v38 }
 0x386   : > { %v2073_v41 = vpop.f32.mrb[57].mxu0 }
 0x387   : > { %v2074_v14 = vadd.f32 %v2073_v41, %v2072_v13  ;;  %v2075_v42 = vpop.f32.mrb[58].mxu0  ;;  %v1513_v44 = vsel %vm1481_vm11, %v1451_v39, %v1497_v40 }
 0x388   : > { %v2076_v45 = vpop.f32.mrb[59].mxu0  ;;  %v1523_v51 = vpack.c.bf16 %v1513_v44, %v1512_v43 }
 0x389   : > { %v1456_v54 = vadd.f32 %v2074_v14, %v2978_v26  ;;  %v2077_v55 = vadd.f32 %v2076_v45, %v2075_v42 }
 0x38a   : > { %1717 = vmatmul.mubr.bf16.gmra.mrb[44].mxu1 %v1523_v51 }
 0x38b   : > { %v1498_v56 = vmul.f32 0.1, %v1456_v54  ;;  %v1459_v57 = vadd.f32 %v2077_v55, %v2978_v26  ;;  %1726 = vmatprep.mubr.bf16.mxu1 %v2541_v0  ;;  %vm1482_vm12 = vcmp.gt.f32.partialorder %v1456_v54, 0.0 }
 0x38d   : > { %vm1483_vm13 = vcmp.gt.f32.partialorder %v1459_v57, 0.0  ;;  %v1499_v58 = vmul.f32 0.1, %v1459_v57  ;;  %v2078_v46 = vpop.f32.mrb[60].mxu0  ;;  %v1514_v61 = vsel %vm1482_vm12, %v1456_v54, %v1498_v56 }
 0x38e   : > { %v2079_v47 = vpop.f32.mrb[61].mxu0 }
 0x38f   : > { %v2080_v59 = vadd.f32 %v2079_v47, %v2078_v46  ;;  %v2081_v60 = vpop.f32.mrb[62].mxu0  ;;  %v1515_v62 = vsel %vm1483_vm13, %v1459_v57, %v1499_v58 }
 0x390   : > { %v2082_v48 = vpop.f32.mrb[63].mxu0  ;;  %v1524_v63 = vpack.c.bf16 %v1515_v62, %v1514_v61 }
 0x391   : > { %v1464_v1 = vadd.f32 %v2080_v59, %v2978_v26  ;;  %v2083_v49 = vadd.f32 %v2082_v48, %v2081_v60 }
 0x392   : > { %1727 = vmatmul.mubr.bf16.gmra.mrb[48].mxu1 %v1524_v63 }
 0x393   : > { %v1500_v2 = vmul.f32 0.1, %v1464_v1  ;;  %v1467_v3 = vadd.f32 %v2083_v49, %v2978_v26  ;;  %1736 = vmatprep.mubr.bf16.mxu1 %v2541_v0  ;;  %vm1484_vm14 = vcmp.gt.f32.partialorder %v1464_v1, 0.0 }
 0x395   : > { %vm1485_vm15 = vcmp.gt.f32.partialorder %v1467_v3, 0.0  ;;  %v1501_v4 = vmul.f32 0.1, %v1467_v3  ;;  %v1516_v5 = vsel %vm1484_vm14, %v1464_v1, %v1500_v2 }
 0x397   : > { %v1517_v6 = vsel %vm1485_vm15, %v1467_v3, %v1501_v4 }
 0x398   : > { %v1525_v7 = vpack.c.bf16 %v1517_v6, %v1516_v5 }
 0x39a   : > { %1737 = vmatmul.mubr.bf16.gmra.mrb[52].mxu1 %v1525_v7 }
 0x435   : > { %v1668_v26 = vpop.f32.mrb[64].mxu0 }
 0x436   : > { %v1669_v0 = vadd.f32 %v1668_v26, %v3007_v9  ;;  %v1670_v15 = vpop.f32.mrb[65].mxu0 }
 0x437   : > { %v1671_v16 = vadd.f32 %v1670_v15, %v3010_v11  ;;  %v1672_v50 = vpop.f32.mrb[66].mxu0 }
 0x438   : > { %1747 = vst [vmem:[%s3014_s16] sm:$0xff] %v1669_v0  ;;  %v1673_v10 = vadd.f32 %v1672_v50, %v3007_v9  ;;  %v1674_v12 = vpop.f32.mrb[67].mxu0 }
 0x439   : > { %1748 = vst [vmem:[%s3014_s16 + $0x8] sm:$0xff] %v1671_v16  ;;  %v1675_v17 = vadd.f32 %v1674_v12, %v3010_v11 }
 0x43a   : > { %1749 = vst [vmem:[%s3014_s16 + $0x10] sm:$0xff] %v1673_v10 }
 0x43b   : > { %1750 = vst [vmem:[%s3014_s16 + $0x18] sm:$0xff] %v1675_v17 }
 0x43d   : > { %v1678_v18 = vpop.f32.mrb[68].mxu0 }
 0x43e   : > { %v1679_v19 = vadd.f32 %v1678_v18, %v3007_v9  ;;  %v1680_v20 = vpop.f32.mrb[69].mxu0 }
 0x43f   : > { %v1681_v52 = vadd.f32 %v1680_v20, %v3010_v11  ;;  %v1682_v21 = vpop.f32.mrb[70].mxu0 }
 0x440   : > { %1751 = vst [vmem:[%s3014_s16 + $0x20] sm:$0xff] %v1679_v19  ;;  %v1683_v53 = vadd.f32 %v1682_v21, %v3007_v9  ;;  %v1684_v22 = vpop.f32.mrb[71].mxu0 }
 0x441   : > { %1752 = vst [vmem:[%s3014_s16 + $0x28] sm:$0xff] %v1681_v52  ;;  %v1685_v23 = vadd.f32 %v1684_v22, %v3010_v11 }
 0x442   : > { %1753 = vst [vmem:[%s3014_s16 + $0x30] sm:$0xff] %v1683_v53 }
 0x443   : > { %1754 = vst [vmem:[%s3014_s16 + $0x38] sm:$0xff] %v1685_v23 }
 0x445   : > { %v1688_v24 = vpop.f32.mrb[32].mxu1 }
 0x446   : > { %v1689_v25 = vadd.f32 %v1688_v24, %v3007_v9  ;;  %v1690_v27 = vpop.f32.mrb[33].mxu1 }
 0x447   : > { %v1691_v28 = vadd.f32 %v1690_v27, %v3010_v11  ;;  %v1692_v29 = vpop.f32.mrb[34].mxu1 }
 0x448   : > { %1755 = vst [vmem:[%s3014_s16 + $0x40] sm:$0xff] %v1689_v25  ;;  %v1693_v30 = vadd.f32 %v1692_v29, %v3007_v9  ;;  %v1694_v31 = vpop.f32.mrb[35].mxu1 }
 0x449   : > { %1756 = vst [vmem:[%s3014_s16 + $0x48] sm:$0xff] %v1691_v28  ;;  %v1695_v32 = vadd.f32 %v1694_v31, %v3010_v11 }
 0x44a   : > { %1757 = vst [vmem:[%s3014_s16 + $0x50] sm:$0xff] %v1693_v30 }
 0x44b   : > { %1758 = vst [vmem:[%s3014_s16 + $0x58] sm:$0xff] %v1695_v32 }
 0x44d   : > { %v1698_v33 = vpop.f32.mrb[36].mxu1 }
 0x44e   : > { %v1699_v34 = vadd.f32 %v1698_v33, %v3007_v9  ;;  %v1700_v35 = vpop.f32.mrb[37].mxu1 }
 0x44f   : > { %v1701_v36 = vadd.f32 %v1700_v35, %v3010_v11  ;;  %v1702_v37 = vpop.f32.mrb[38].mxu1 }
 0x450   : > { %1759 = vst [vmem:[%s3014_s16 + $0x60] sm:$0xff] %v1699_v34  ;;  %v1703_v38 = vadd.f32 %v1702_v37, %v3007_v9  ;;  %v1704_v39 = vpop.f32.mrb[39].mxu1 }
 0x451   : > { %1760 = vst [vmem:[%s3014_s16 + $0x68] sm:$0xff] %v1701_v36  ;;  %v1705_v40 = vadd.f32 %v1704_v39, %v3010_v11 }
 0x452   : > { %1761 = vst [vmem:[%s3014_s16 + $0x70] sm:$0xff] %v1703_v38 }
 0x453   : > { %1762 = vst [vmem:[%s3014_s16 + $0x78] sm:$0xff] %v1705_v40 }
 0x455   : > { %v1708_v13 = vpop.f32.mrb[40].mxu1 }
 0x456   : > { %v1709_v41 = vadd.f32 %v1708_v13, %v3007_v9  ;;  %v1710_v14 = vpop.f32.mrb[41].mxu1 }
 0x457   : > { %v1711_v42 = vadd.f32 %v1710_v14, %v3010_v11  ;;  %v1712_v43 = vpop.f32.mrb[42].mxu1 }
 0x458   : > { %1763 = vst [vmem:[%s3014_s16 + $0x80] sm:$0xff] %v1709_v41  ;;  %v1713_v44 = vadd.f32 %v1712_v43, %v3007_v9  ;;  %v1714_v45 = vpop.f32.mrb[43].mxu1 }
 0x459   : > { %1764 = vst [vmem:[%s3014_s16 + $0x88] sm:$0xff] %v1711_v42  ;;  %v1715_v51 = vadd.f32 %v1714_v45, %v3010_v11 }
 0x45a   : > { %1765 = vst [vmem:[%s3014_s16 + $0x90] sm:$0xff] %v1713_v44 }
 0x45b   : > { %1766 = vst [vmem:[%s3014_s16 + $0x98] sm:$0xff] %v1715_v51 }
 0x45d   : > { %v1718_v54 = vpop.f32.mrb[44].mxu1 }
 0x45e   : > { %v1719_v55 = vadd.f32 %v1718_v54, %v3007_v9  ;;  %v1720_v56 = vpop.f32.mrb[45].mxu1 }
 0x45f   : > { %v1721_v57 = vadd.f32 %v1720_v56, %v3010_v11  ;;  %v1722_v58 = vpop.f32.mrb[46].mxu1 }
 0x460   : > { %1767 = vst [vmem:[%s3014_s16 + $0xa0] sm:$0xff] %v1719_v55  ;;  %v1723_v46 = vadd.f32 %v1722_v58, %v3007_v9  ;;  %v1724_v47 = vpop.f32.mrb[47].mxu1 }
 0x461   : > { %1768 = vst [vmem:[%s3014_s16 + $0xa8] sm:$0xff] %v1721_v57  ;;  %v1725_v59 = vadd.f32 %v1724_v47, %v3010_v11 }
 0x462   : > { %1769 = vst [vmem:[%s3014_s16 + $0xb0] sm:$0xff] %v1723_v46 }
 0x463   : > { %1770 = vst [vmem:[%s3014_s16 + $0xb8] sm:$0xff] %v1725_v59 }
 0x465   : > { %v1728_v60 = vpop.f32.mrb[48].mxu1 }
 0x466   : > { %v1729_v61 = vadd.f32 %v1728_v60, %v3007_v9  ;;  %v1730_v62 = vpop.f32.mrb[49].mxu1 }
 0x467   : > { %v1731_v48 = vadd.f32 %v1730_v62, %v3010_v11  ;;  %v1732_v63 = vpop.f32.mrb[50].mxu1 }
 0x468   : > { %1771 = vst [vmem:[%s3014_s16 + $0xc0] sm:$0xff] %v1729_v61  ;;  %v1733_v1 = vadd.f32 %v1732_v63, %v3007_v9  ;;  %v1734_v49 = vpop.f32.mrb[51].mxu1 }
 0x469   : > { %1772 = vst [vmem:[%s3014_s16 + $0xc8] sm:$0xff] %v1731_v48  ;;  %v1735_v2 = vadd.f32 %v1734_v49, %v3010_v11 }
 0x46a   : > { %1773 = vst [vmem:[%s3014_s16 + $0xd0] sm:$0xff] %v1733_v1 }
 0x46b   : > { %1774 = vst [vmem:[%s3014_s16 + $0xd8] sm:$0xff] %v1735_v2 }
 0x46d   : > { %v1738_v3 = vpop.f32.mrb[52].mxu1 }
 0x46e   : > { %v1739_v4 = vadd.f32 %v1738_v3, %v3007_v9  ;;  %v1740_v5 = vpop.f32.mrb[53].mxu1 }
 0x46f   : > { %v1741_v6 = vadd.f32 %v1740_v5, %v3010_v11  ;;  %v1742_v7 = vpop.f32.mrb[54].mxu1 }
 0x470   : > { %1775 = vst [vmem:[%s3014_s16 + $0xe0] sm:$0xff] %v1739_v4  ;;  %v1743_v8 = vadd.f32 %v1742_v7, %v3007_v9  ;;  %v1744_v26 = vpop.f32.mrb[55].mxu1 }
 0x471   : > { %1776 = vst [vmem:[%s3014_s16 + $0xe8] sm:$0xff] %v1741_v6  ;;  %v1745_v0 = vadd.f32 %v1744_v26, %v3010_v11 }
 0x472   : > { %1777 = vst [vmem:[%s3014_s16 + $0xf0] sm:$0xff] %v1743_v8 }
 0x473   : > { %1778 = vst [vmem:[%s3014_s16 + $0xf8] sm:$0xff] %v1745_v0 }
 0x474   : > { %2469 = shalt.err (!%p2466_p13)
}
 0x475   : > { %s2470_s24 = scalar_lea.hbm %s3079_s15, 4096  ;;  %s2474_s21 = scalar_lea.hbm %s3138_s9, 8192 }
 0x476   : > { %p2471_p9 = scmp.ne.s32.totalorder %s3079_s15, %s2470_s24  ;;  %p2475_p6 = scmp.lt.u32.totalorder %s3079_s15, %s3138_s9 }
 0x477   : > { %p2476_p4 = scmp.lt.u32.totalorder %s2474_s21, %s2470_s24  ;;  %p2478_p10 = scmp.lt.u32.totalorder %s2470_s24, %s3079_s15 }
 0x478   : > { %p2472_p0 = pnand %p2471_p9, %p2773_p3 }
 0x479   : > { %p2477_p8 = por %p2476_p4, %p2475_p6 }
 0x47a   : > { %p2473_p11 = pneg %p2472_p0 }
 0x47b   : > { %p2479_p5 = por %p2478_p10, %p2477_p8 }
 0x47d   : > { %p2480_p7 = pnand %p2479_p5, %p2473_p11 }
 0x47f   : > { %2483 = shalt.err (!%p2480_p7)
}
 0x480   : > { %s2543_s23 = smov 256   ;;  %s2544_s19 = smov 16  }
 0x481   : > { %2118 = dma.vmem_to_hbm [thread:$0]  (%p2773_p3), %s3081_s1, 4096, %s3079_s15, %s1780_s13, %s2543_s23, %s2543_s23, %s2544_s19  }
 0x482 PF: > { %s3170_s17 = sld [smem:[#allocation16_spill]]  ;;  %s3171_s30 = sld [smem:[#allocation17_spill]] }
 0x483   : > { %p3173_p1 = scmp.ge.s32.totalorder %s2530_s12, 2 }
 0x488   : > { %s1809_s22 = sand.u32 1, %s3170_s17   ;;  %p3172_p12 = scmp.ne.s32.totalorder %s3171_s30, 0 }
 0x489   : > { %s1810_s27 = scalar_lea.sflag [#allocation4], %s1809_s22 }
 0x48a   : > { %p2138_p2 = pnand %p3173_p1, %p3172_p12 }
 0x48c   : > { %2513 = dma.done.wait (!%p2138_p2), %s1810_s27, 4096  }
 0x48d   : > { %2515 = vsyncadd (!%p2138_p2), %s1810_s27, 4294963200  ;;  %p24_p13 = scmp.ge.s32.totalorder %s2760_s20, 4   ;;  %s3174_s30 = smov %s2522_s10 }
 0x48e   : > { %s3175_s10 = smov %s2526_s11  ;;  %s3176_s11 = smov %s2769_s29 }
 0x48f   : > { %s3177_s12 = smov %s2760_s20  ;;  %26 = sbr.rel (!%p24_p13) target bundleno = 9 (0x9), region = 117 }
 0x496   :  { %1815 = vsyncpa [#allocation3], 1 }
 0x497   :  { %1817 = vsyncpa [#allocation3 + $0x1], 1 }
 0x498   :  { %1818 = vsyncpa [#allocation6], 1 }
 0x499   :  { %1819 = vsyncpa [#allocation9], 1 }
 0x49a   :  { %1820 = vsyncpa [#allocation4], 1 }
 0x49b   :  { %1822 = vsyncpa [#allocation4 + $0x1], 1 }

</bundles_post_ra>
